<compile_context>
chip_gen: v6e
topology: v6e:2x2x1
jax: 0.10.0
libtpu: 0.0.40
codegen_flags: <defaults>
</compile_context>

<pallas_src>
import functools

import jax
import jax.numpy as jnp
import numpy as np
from jax.experimental import pallas as pl
from jax.experimental.pallas import tpu as pltpu


def _round_up(x, m):
    return ((x + m - 1) // m) * m


def _sine_layer_kernel(x_ref, wt_ref, b_ref, o_ref):
    """One (i, j) output tile: sin(x_tile @ Wt_tile + b_tile).

    omega_0 is already folded into wt_ref / b_ref.
    """
    acc = jnp.dot(x_ref[...], wt_ref[...], preferred_element_type=jnp.float32)
    o_ref[...] = jnp.sin(acc + b_ref[...]).astype(o_ref.dtype)


def prepare_sine_layer_params(weight, bias, *, omega_0=30.0):
    """One-time parameter transform (do this at init, not per forward call).

    weight: (N, K) torch.nn.Linear layout (out_features, in_features)
    bias:   (N,)
    returns (wt, b2) with omega_0 folded in:
        wt: (K, N) float32,  b2: (1, N) float32
    """
    omega_0 = jnp.float32(omega_0)
    wt = (omega_0 * weight).T.astype(jnp.float32)
    b2 = (omega_0 * bias).reshape(1, -1).astype(jnp.float32)
    return wt, b2


def sine_layer(x, wt, b2, *, tm=1024, tn=None):
    """Pallas forward: sin(x @ wt + b2)  (omega_0 pre-folded into wt/b2).

    x:  (M, K) float32
    wt: (K, N) float32
    b2: (1, N) float32
    returns (M, N) float32
    """
    M, K = x.shape
    K2, N = wt.shape
    assert K == K2 and b2.shape == (1, N)
    out_dtype = x.dtype

    # Lane-dense output tile: tn is a multiple of 128; pad N up to it.
    if tn is None:
        tn = _round_up(N, 128)
    else:
        tn = _round_up(tn, 128)
    n_pad = _round_up(N, tn)

    # Big M tile for the HBM-bound stream, but never bigger than (padded) M.
    tm = _round_up(max(int(tm), 8), 8)
    tm_eff = min(tm, _round_up(M, 8))
    m_pad = _round_up(M, tm_eff)

    # Pad ragged edges with zeros (sliced off at the end).  K is never tiled,
    # so tiny in_features (2/3 for the first SIREN layer) is fine as-is.
    xp = x if m_pad == M else jnp.pad(x, ((0, m_pad - M), (0, 0)))
    wtp = wt if n_pad == N else jnp.pad(wt, ((0, 0), (0, n_pad - N)))
    b2p = b2 if n_pad == N else jnp.pad(b2, ((0, 0), (0, n_pad - N)))

    grid = (m_pad // tm_eff, n_pad // tn)

    # Raise the scoped-VMEM limit only when the double-buffered working set
    # exceeds the conservative default window; cap below v7x's 64 MiB VMEM.
    bytes_needed = 4 * 2 * (tm_eff * K + K * tn + tm_eff * tn + tn)
    vmem_limit = None
    if bytes_needed > 16 * 1024 * 1024:
        vmem_limit = min(int(bytes_needed * 3 // 2), 60 * 1024 * 1024)

    out = pl.pallas_call(
        _sine_layer_kernel,
        out_shape=jax.ShapeDtypeStruct((m_pad, n_pad), out_dtype),
        grid=grid,
        in_specs=[
            pl.BlockSpec((tm_eff, K), lambda i, j: (i, 0)),  # x tile (streams over M)
            pl.BlockSpec((K, tn), lambda i, j: (0, j)),      # W^T tile (small, resident)
            pl.BlockSpec((1, tn), lambda i, j: (0, j)),      # bias tile
        ],
        out_specs=pl.BlockSpec((tm_eff, tn), lambda i, j: (i, j)),
        compiler_params=pltpu.CompilerParams(
            dimension_semantics=("parallel", "parallel"),
            vmem_limit_bytes=vmem_limit,
        ),
    )(xp, wtp, b2p)

    if m_pad != M or n_pad != N:
        out = out[:M, :N]
    return out


def init_sine_layer_params(key, in_features, out_features, *, is_first, omega_0):
    """Re-implementation of SineLayer.init_weights (+ default nn.Linear bias init)."""
    kw, kb = jax.random.split(key)
    if is_first:
        bound_w = 1.0 / in_features
    else:
        bound_w = np.sqrt(6.0 / in_features) / omega_0
    weight = jax.random.uniform(
        kw, (out_features, in_features), jnp.float32, -bound_w, bound_w
    )
    # torch.nn.Linear default bias init: U(-1/sqrt(in_features), 1/sqrt(in_features))
    bound_b = 1.0 / np.sqrt(in_features)
    bias = jax.random.uniform(kb, (out_features,), jnp.float32, -bound_b, bound_b)
    return weight, bias


def _reference(x, weight, bias, omega_0):
    lin = jnp.dot(x, weight.T, precision=jax.lax.Precision.HIGHEST) + bias
    return jnp.sin(omega_0 * lin)


if __name__ == "__main__":
    key = jax.random.PRNGKey(0)
    omega_0 = 30.0

    # Case 1: small, evenly divisible shapes (hidden-layer-like).
    k1, k2, key = jax.random.split(key, 3)
    batch, in_features, out_features = 128, 32, 64
    x = jax.random.normal(k1, (batch, in_features), jnp.float32)
    weight, bias = init_sine_layer_params(
        k2, in_features, out_features, is_first=True, omega_0=omega_0
    )
    wt, b2 = prepare_sine_layer_params(weight, bias, omega_0=omega_0)
    out = jax.block_until_ready(sine_layer(x, wt, b2))
    ref = _reference(x, weight, bias, omega_0)
    np.testing.assert_allclose(np.asarray(out), np.asarray(ref), rtol=1e-4, atol=1e-4)

    # Case 2: ragged batch + tiny K (realistic first SIREN layer: 3 coords in).
    k3, k4, key = jax.random.split(key, 3)
    batch2, in2, out2 = 77, 3, 64
    x2 = jax.random.normal(k3, (batch2, in2), jnp.float32)
    w2, b2v = init_sine_layer_params(k4, in2, out2, is_first=True, omega_0=omega_0)
    wt2, bb2 = prepare_sine_layer_params(w2, b2v, omega_0=omega_0)
    out2_v = jax.block_until_ready(sine_layer(x2, wt2, bb2))
    ref2 = _reference(x2, w2, b2v, omega_0)
    np.testing.assert_allclose(np.asarray(out2_v), np.asarray(ref2), rtol=1e-4, atol=1e-4)

    print("KERNEL_OK")
</pallas_src>

<mosaic_0001>
module attributes {stable_mosaic.version = 11 : i64} {
  func.func @_sine_layer_kernel(%arg0: i32, %arg1: i32, %arg2: memref<128x32xf32, #tpu.memory_space<vmem>>, %arg3: memref<32x128xf32, #tpu.memory_space<vmem>>, %arg4: memref<1x128xf32, #tpu.memory_space<vmem>>, %arg5: memref<128x128xf32, #tpu.memory_space<vmem>>) attributes {dimension_semantics = [#tpu.dimension_semantics<parallel>, #tpu.dimension_semantics<parallel>], iteration_bounds = array<i64: 1, 1>, scalar_prefetch = 0 : i64, scratch_operands = 0 : i64, tpu.core_type = #tpu.core_type<tc>, window_params = [{transform_indices = @transform_0, window_bounds = array<i64: 128, 32>}, {transform_indices = @transform_1, window_bounds = array<i64: 32, 128>}, {transform_indices = @transform_2, window_bounds = array<i64: 1, 128>}, {transform_indices = @transform_3, window_bounds = array<i64: 128, 128>}]} {
    %c0 = arith.constant 0 : index
    %c0_0 = arith.constant 0 : index
    %0 = vector.load %arg2[%c0, %c0_0] : memref<128x32xf32, #tpu.memory_space<vmem>>, vector<128x32xf32>
    %c0_1 = arith.constant 0 : index
    %c0_2 = arith.constant 0 : index
    %1 = vector.load %arg3[%c0_1, %c0_2] : memref<32x128xf32, #tpu.memory_space<vmem>>, vector<32x128xf32>
    %cst = arith.constant dense<0.000000e+00> : vector<128x128xf32>
    %2 = tpu.matmul %0, %1, %cst {dimension_numbers = #tpu.dot_dimension_numbers<[1], [0], [0], [1], [0, 0, 1, 1], [], []>} : vector<128x32xf32>, vector<32x128xf32>, vector<128x128xf32> -> vector<128x128xf32>
    %c0_3 = arith.constant 0 : index
    %c0_4 = arith.constant 0 : index
    %3 = vector.load %arg4[%c0_3, %c0_4] : memref<1x128xf32, #tpu.memory_space<vmem>>, vector<1x128xf32>
    %4 = vector.broadcast %3 : vector<1x128xf32> to vector<128x128xf32>
    %5 = arith.addf %2, %4 : vector<128x128xf32>
    %6 = math.sin %5 : vector<128x128xf32>
    %c0_5 = arith.constant 0 : index
    %c0_6 = arith.constant 0 : index
    %7 = vector.load %arg5[%c0_5, %c0_6] : memref<128x128xf32, #tpu.memory_space<vmem>>, vector<128x128xf32>
    tpu.vector_store %arg5[%c0_5, %c0_6], %6 {strides = array<i32>} : memref<128x128xf32, #tpu.memory_space<vmem>>, vector<128x128xf32>,
    return
  }
  func.func @transform_0(%arg0: i32, %arg1: i32) -> (i32, i32) {
    %c0_i32 = arith.constant 0 : i32
    %c0_i32_0 = arith.constant 0 : i32
    return %arg0, %c0_i32 : i32, i32
  }
  func.func @transform_1(%arg0: i32, %arg1: i32) -> (i32, i32) {
    %c0_i32 = arith.constant 0 : i32
    %c0_i32_0 = arith.constant 0 : i32
    return %c0_i32, %arg1 : i32, i32
  }
  func.func @transform_2(%arg0: i32, %arg1: i32) -> (i32, i32) {
    %c0_i32 = arith.constant 0 : i32
    %c0_i32_0 = arith.constant 0 : i32
    return %c0_i32, %arg1 : i32, i32
  }
  func.func @transform_3(%arg0: i32, %arg1: i32) -> (i32, i32) {
    %c0_i32 = arith.constant 0 : i32
    return %arg0, %arg1 : i32, i32
  }
}

</mosaic_0001>

<bundles_post_ra>
// kernel: tpu_custom_call.1
= control target key start
LH: loop header
LB: loop body
LE: loop exit
PB: predicated region body
PF: predicated region fallthrough
CT: control target
= control target key end

     0   :  { %vm42_vm0 = vcmask 261120   ;;  %s3460_s0 = inlined_call_operand.vmem [shape: f32[128,32], index: 0, kind: input, shape index: {}]   ;;  %s3461_s1 = inlined_call_operand.vmem [shape: f32[32,128], index: 1, kind: input, shape index: {}]   ;;  %s3462_s2 = inlined_call_operand.vmem [shape: f32[1,128], index: 2, kind: input, shape index: {}]   ;;  %s3463_s3 = inlined_call_operand.hbm [shape: f32[128,128], index: 3, kind: output, shape index: {}]  }
   0x1   :  { %v34_v0 = vld [vmem:[%s3461_s1 + $0x18] sm:$0xff]  ;;  %v33_v1 = vld [vmem:[%s3461_s1 + $0x10] sm:$0xff]  ;;  %v32_v2 = vld [vmem:[%s3461_s1 + $0x8] sm:$0xff] }
   0x2   :  { %2033 = vmatprep.subr.mxu0 %v34_v0  ;;  %2065 = vmatprep.subr.mxu1 %v34_v0  ;;  %v31_v3 = vld [vmem:[%s3461_s1] sm:$0xff] }
   0x3   :  { %2034 = vmatpush3.msra.mxu0 %v34_v0  ;;  %2069 = vmatpush3.msra.mxu1 %v34_v0  ;;  %v15_v4 = vld [vmem:[%s3460_s0] sm:$0xff] }
   0x4   :  { %2035 = vmatprep.subr.mxu0 %v33_v1  ;;  %2066 = vmatprep.subr.mxu1 %v33_v1  ;;  %v23_v5 = vld [vmem:[%s3460_s0 + $0x40] sm:$0xff] }
   0x5   :  { %2036 = vmatpush3.msra.mxu0 %v33_v1  ;;  %2070 = vmatpush3.msra.mxu1 %v33_v1 }
   0x6   :  { %2037 = vmatprep.subr.mxu0 %v32_v2  ;;  %2067 = vmatprep.subr.mxu1 %v32_v2 }
   0x7   :  { %2038 = vmatpush3.msra.mxu0 %v32_v2  ;;  %2071 = vmatpush3.msra.mxu1 %v32_v2 }
   0x8   :  { %8 = vsyncpa [#allocation3], 0  ;;  %2039 = vmatprep.subr.mxu0 %v31_v3  ;;  %2068 = vmatprep.subr.mxu1 %v31_v3  ;;  %v16_v6 = vld [vmem:[%s3460_s0 + $0x8] sm:$0xff]  ;;  %v17_v8 = vld [vmem:[%s3460_s0 + $0x10] sm:$0xff]  ;;  %v2234_v56 = vmov 683565275  }
   0x9   :  { %v24_v7 = vld [vmem:[%s3460_s0 + $0x48] sm:$0xff]  ;;  %2040 = vmatpush3.msra.mxu0 %v31_v3  ;;  %2072 = vmatpush3.msra.mxu1 %v31_v3  ;;  %v25_v9 = vld [vmem:[%s3460_s0 + $0x50] sm:$0xff]  ;;  %v18_v10 = vld [vmem:[%s3460_s0 + $0x18] sm:$0xff]  ;;  %v2235_v60 = vmov 2475754826  }
   0xa   :  { %2041 = vmatprep.mubr.msk.f32.mxu0 %vm42_vm0, %v15_v4  ;;  %2053 = vmatprep.mubr.msk.f32.mxu1 %vm42_vm0, %v23_v5  ;;  %v26_v11 = vld [vmem:[%s3460_s0 + $0x58] sm:$0xff]  ;;  %v19_v12 = vld [vmem:[%s3460_s0 + $0x20] sm:$0xff]  ;;  %v20_v14 = vld [vmem:[%s3460_s0 + $0x28] sm:$0xff]  ;;  %v2236_v62 = vmov 2131351028  }
   0xb   :  { %2042 = vmatmul.mubr.msk.f32.vlgmr.msra.gmra.mxu0 %vm42_vm0, %v16_v6  ;;  %2054 = vmatmul.mubr.msk.f32.vlgmr.msra.gmra.mxu1 %vm42_vm0, %v24_v7  ;;  %v27_v13 = vld [vmem:[%s3460_s0 + $0x60] sm:$0xff]  ;;  %v28_v15 = vld [vmem:[%s3460_s0 + $0x68] sm:$0xff]  ;;  %v21_v16 = vld [vmem:[%s3460_s0 + $0x30] sm:$0xff]  ;;  %v2237_v0 = vmov 2102212464  }
   0xc   :  { %2044 = vmatprep.mubr.msk.f32.mxu0 %vm42_vm0, %v17_v8  ;;  %2056 = vmatprep.mubr.msk.f32.mxu1 %vm42_vm0, %v25_v9  ;;  %v29_v17 = vld [vmem:[%s3460_s0 + $0x70] sm:$0xff]  ;;  %v22_v18 = vld [vmem:[%s3460_s0 + $0x38] sm:$0xff]  ;;  %v2342_v20 = vld [vmem:[%s3462_s2] ss:$0 sm:$0xff]  ;;  %v2238_v2 = vmov 920167782  }
   0xd   :  { %v30_v19 = vld [vmem:[%s3460_s0 + $0x78] sm:$0xff]  ;;  %v2239_v9 = vmov 1326507024  }
   0xf   :  { %2045 = vmatmul.mubr.msk.f32.gmra.mxu0 %vm42_vm0, %v18_v10  ;;  %2057 = vmatmul.mubr.msk.f32.gmra.mxu1 %vm42_vm0, %v26_v11 }
  0x10   :  { %2047 = vmatprep.mubr.msk.f32.mxu0 %vm42_vm0, %v19_v12  ;;  %2059 = vmatprep.mubr.msk.f32.mxu1 %vm42_vm0, %v27_v13 }
  0x13   :  { %2048 = vmatmul.mubr.msk.f32.gmra.mxu0 %vm42_vm0, %v20_v14  ;;  %2060 = vmatmul.mubr.msk.f32.gmra.mxu1 %vm42_vm0, %v28_v15 }
  0x14   :  { %2050 = vmatprep.mubr.msk.f32.mxu0 %vm42_vm0, %v21_v16  ;;  %2062 = vmatprep.mubr.msk.f32.mxu1 %vm42_vm0, %v29_v17 }
  0x17   :  { %2051 = vmatmul.mubr.msk.f32.gmra.mxu0 %vm42_vm0, %v22_v18  ;;  %2063 = vmatmul.mubr.msk.f32.gmra.mxu1 %vm42_vm0, %v30_v19 }
  0xcb   :  { %v2043_v21 = vpop.f32.mrf.mxu0  ;;  %v2055_v22 = vpop.f32.mrf.mxu1 }
  0xcc   :  { %v2345_v23 = vadd.f32 %v2043_v21, %v2342_v20  ;;  %v2348_v24 = vadd.f32 %v2055_v22, %v2342_v20 }
  0xcd   :  { %v157_v25 = vpop.f32.mrf.mxu0  ;;  %v197_v44 = vpop.f32.mrf.mxu1 }
  0xce   :  { %v340_v26 = vand.u32 2147483647, %v2345_v23  ;;  %v343_v27 = vand.u32 2139095040, %v2345_v23  ;;  %v1172_v28 = vand.u32 2147483647, %v2348_v24  ;;  %v1175_v29 = vand.u32 2139095040, %v2348_v24 }
  0xcf   :  { %v2357_v32 = vadd.f32 %v2342_v20, %v157_v25  ;;  %v2364_v50 = vadd.f32 %v2342_v20, %v197_v44  ;;  %vm342_vm14 = vcmp.lt.s32.totalorder %v2345_v23, 0 }
  0xd0   :  { %v344_v30 = vshrl.u32 %v343_v27, 23  ;;  %v347_v31 = vand.u32 8388607, %v340_v26  ;;  %v1176_v33 = vshrl.u32 %v1175_v29, 23  ;;  %v1179_v34 = vand.u32 8388607, %v1172_v28 }
  0xd1   :  { %v239_v37 = vand.u32 2139095040, %v2357_v32  ;;  %v236_v42 = vand.u32 2147483647, %v2357_v32  ;;  %vm2469_vm15 = vcmp.le.f32.partialorder %v340_v26, 0.7853982 }
  0xd2   :  { %v1953_v35 = vadd.s32 4294967169, %v344_v30  ;;  %v1985_v36 = vadd.s32 4294967169, %v1176_v33  ;;  %v348_v38 = vor.u32 8388608, %v347_v31  ;;  %v1180_v40 = vor.u32 8388608, %v1179_v34 }
  0xd3   :  { %v240_v43 = vshrl.u32 %v239_v37, 23  ;;  %v2374_v54 = vand.u32 8388607, %v236_v42 }
  0xd4   :  { %v350_v39 = vadd.s32 1, %v1953_v35  ;;  %v1182_v41 = vadd.s32 1, %v1985_v36  ;;  %v2366_v51 = vshll.u32 %v348_v38, 8  ;;  %v2370_v53 = vshll.u32 %v1180_v40, 8 }
  0xd5   :  { %v1949_v46 = vadd.s32 4294967169, %v240_v43 }
  0xd6   :  { %vm351_vm1 = vcmp.gt.s32.totalorder %v350_v39, 0  ;;  %vm1183_vm2 = vcmp.gt.s32.totalorder %v1182_v41, 0 }
  0xd7   :  { %v352_v45 = vsel %vm351_vm1, %v350_v39, 0  ;;  %v1184_v49 = vsel %vm1183_vm2, %v1182_v41, 0  ;;  %v2377_v59 = vadd.s32 1, %v1949_v46 }
  0xd8   :  { %v353_v47 = vshrl.u32 %v352_v45, 5  ;;  %v354_v48 = vand.u32 31, %v352_v45  ;;  %v2368_v52 = vshrl.u32 %v1184_v49, 5  ;;  %v1186_v58 = vand.u32 31, %v1184_v49 }
  0xd9   :  { %vm247_vm12 = vcmp.gt.s32.totalorder %v2377_v59, 0 }
  0xda   :  { %v355_v55 = vsub.s32 32, %v354_v48  ;;  %v357_v57 = vshll.u32 %v2234_v56, %v354_v48  ;;  %v360_v61 = vshll.u32 %v2235_v60, %v354_v48  ;;  %v363_v63 = vshll.u32 %v2236_v62, %v354_v48 }
  0xdb   :  { %v366_v1 = vshll.u32 %v2237_v0, %v354_v48  ;;  %v369_v3 = vshll.u32 %v2238_v2, %v354_v48  ;;  %vm372_vm3 = vcmp.lt.s32.totalorder %v353_v47, 1  ;;  %vm373_vm4 = vcmp.lt.s32.totalorder %v353_v47, 2 }
  0xdc   :  { %v358_v4 = vshrl.u32 %v2235_v60, %v355_v55  ;;  %v361_v5 = vshrl.u32 %v2236_v62, %v355_v55  ;;  %v364_v6 = vshrl.u32 %v2237_v0, %v355_v55  ;;  %v356_v7 = vshrl.u32 %v2234_v56, %v355_v55 }
  0xdd   :  { %v367_v8 = vshrl.u32 %v2238_v2, %v355_v55  ;;  %v370_v10 = vshrl.u32 %v2239_v9, %v355_v55  ;;  %v1187_v14 = vsub.s32 32, %v1186_v58  ;;  %vm374_vm5 = vcmp.lt.s32.totalorder %v353_v47, 3 }
  0xde   :  { %v359_v11 = vor.u32 %v358_v4, %v357_v57  ;;  %v362_v12 = vor.u32 %v361_v5, %v360_v61  ;;  %v365_v13 = vor.u32 %v364_v6, %v363_v63  ;;  %vm375_vm6 = vcmp.lt.s32.totalorder %v353_v47, 4 }
  0xdf   :  { %v368_v15 = vor.u32 %v367_v8, %v366_v1  ;;  %v371_v16 = vor.u32 %v370_v10, %v369_v3  ;;  %v1189_v29 = vshll.u32 %v2234_v56, %v1186_v58  ;;  %v1190_v33 = vshrl.u32 %v2235_v60, %v1187_v14 }
  0xe0   :  { %v376_v17 = vsel %vm372_vm3, %v356_v7, %v359_v11  ;;  %v377_v18 = vsel %vm375_vm6, %v365_v13, 2102212464  ;;  %v380_v19 = vsel %vm372_vm3, %v359_v11, %v362_v12  ;;  %v384_v21 = vsel %vm372_vm3, %v362_v12, %v365_v13 }
  0xe1   :  { %v378_v22 = vsel %vm374_vm5, %v362_v12, %v377_v18  ;;  %v381_v25 = vsel %vm375_vm6, %v368_v15, 920167782  ;;  %v385_v27 = vsel %vm375_vm6, %v371_v16, 1326507024  ;;  %v1192_v34 = vshll.u32 %v2235_v60, %v1186_v58 }
  0xe2   :  { %v382_v30 = vsel %vm374_vm5, %v365_v13, %v381_v25  ;;  %v386_v31 = vsel %vm374_vm5, %v368_v15, %v385_v27  ;;  %v379_v35 = vsel %vm373_vm4, %v376_v17, %v378_v22  ;;  %v1193_v38 = vshrl.u32 %v2236_v62, %v1187_v14 }
  0xe3   :  { %v383_v36 = vsel %vm373_vm4, %v380_v19, %v382_v30  ;;  %v387_v37 = vsel %vm373_vm4, %v384_v21, %v386_v31  ;;  %v1191_v44 = vor.u32 %v1190_v33, %v1189_v29  ;;  %v1195_v46 = vshll.u32 %v2236_v62, %v1186_v58 }
  0xe4   :  { %v2400_v39 = vmul.u32.u64.low %v2366_v51, %v387_v37  ;;  %v2401_v40 = vmul.u32.u64.high %v2366_v51, %v387_v37, %v2400_v39  ;;  %v2404_v41 = vmul.u32.u64.low %v2366_v51, %v383_v36  ;;  %v2405_v43 = vmul.u32.u64.high %v2366_v51, %v383_v36, %v2404_v41 }
  0xe5   :  { %v1194_v45 = vor.u32 %v1193_v38, %v1192_v34  ;;  %v1196_v48 = vshrl.u32 %v2237_v0, %v1187_v14  ;;  %v1188_v49 = vshrl.u32 %v2234_v56, %v1187_v14  ;;  %v1198_v47 = vshll.u32 %v2237_v0, %v1186_v58 }
  0xe6   :  { %v1199_v55 = vshrl.u32 %v2238_v2, %v1187_v14  ;;  %v1202_v57 = vshrl.u32 %v2239_v9, %v1187_v14  ;;  %v395_v61 = vmul.u32 %v2366_v51, %v379_v35  ;;  %v1201_v1 = vshll.u32 %v2238_v2, %v1186_v58 }
  0xe7   :  { %v1197_v63 = vor.u32 %v1196_v48, %v1195_v46  ;;  %vm1204_vm7 = vcmp.lt.s32.totalorder %v2368_v52, 1  ;;  %vm397_vm8 = vc.u32 %v2401_v40, %v2404_v41  ;;  %v398_v3 = vadd.s32 1, %v2405_v43 }
  0xe8   :  { %v1200_v4 = vor.u32 %v1199_v55, %v1198_v47  ;;  %vm1205_vm9 = vcmp.lt.s32.totalorder %v2368_v52, 2  ;;  %v1203_v5 = vor.u32 %v1202_v57, %v1201_v1  ;;  %vm1206_vm10 = vcmp.lt.s32.totalorder %v2368_v52, 3 }
  0xe9   :  { %vm1207_vm11 = vcmp.lt.s32.totalorder %v2368_v52, 4  ;;  %v1212_v6 = vsel %vm1204_vm7, %v1191_v44, %v1194_v45  ;;  %v399_v51 = vsel %vm397_vm8, %v398_v3, %v2405_v43  ;;  %v1216_v58 = vsel %vm1204_vm7, %v1194_v45, %v1197_v63 }
  0xea   :  { %v1209_v7 = vsel %vm1207_vm11, %v1197_v63, 2102212464  ;;  %v1213_v8 = vsel %vm1207_vm11, %v1200_v4, 920167782  ;;  %v400_v10 = vadd.s32 %v399_v51, %v395_v61  ;;  %v1208_v11 = vsel %vm1204_vm7, %v1188_v49, %v1191_v44 }
  0xeb   :  { %v1214_v12 = vsel %vm1206_vm10, %v1197_v63, %v1213_v8  ;;  %v1217_v13 = vsel %vm1207_vm11, %v1203_v5, 1326507024  ;;  %v1210_v14 = vsel %vm1206_vm10, %v1194_v45, %v1209_v7  ;;  %v248_v27 = vsel %vm247_vm12, %v2377_v59, 0 }
  0xec   :  { %v1215_v15 = vsel %vm1205_vm9, %v1212_v6, %v1214_v12  ;;  %v1218_v16 = vsel %vm1206_vm10, %v1200_v4, %v1217_v13  ;;  %v401_v17 = vadd.s32 536870912, %v400_v10  ;;  %v1211_v30 = vsel %vm1205_vm9, %v1208_v11, %v1210_v14 }
  0xed   :  { %v1219_v18 = vsel %vm1205_vm9, %v1216_v58, %v1218_v16  ;;  %v2428_v19 = vmul.u32.u64.low %v2370_v53, %v1215_v15  ;;  %v2429_v21 = vmul.u32.u64.high %v2370_v53, %v1215_v15, %v2428_v19  ;;  %v250_v31 = vand.u32 31, %v248_v27 }
  0xee   :  { %v2433_v22 = vmul.u32.u64.low %v2370_v53, %v1219_v18  ;;  %v2434_v25 = vmul.u32.u64.high %v2370_v53, %v1219_v18, %v2433_v22  ;;  %v402_v29 = vshrl.u32 %v401_v17, 30  ;;  %v1071_v33 = vand.u32 2139095040, %v2364_v50 }
  0xef   :  { %v1230_v35 = vadd.s32 1, %v2429_v21  ;;  %v244_v36 = vor.u32 8388608, %v2374_v54  ;;  %v1227_v37 = vmul.u32 %v2370_v53, %v1211_v30  ;;  %v251_v38 = vsub.s32 32, %v250_v31 }
  0xf0   :  { %v403_v34 = vshll.u32 %v402_v29, 30  ;;  %vm1229_vm13 = vc.u32 %v2434_v25, %v2428_v19  ;;  %v1072_v52 = vshrl.u32 %v1071_v33, 23  ;;  %v396_v44 = vadd.s32 %v2404_v41, %v2401_v40 }
  0xf1   :  { %v1231_v59 = vsel %vm1229_vm13, %v1230_v35, %v2429_v21  ;;  %v2451_v46 = vshll.u32 %v244_v36, 8  ;;  %v1068_v53 = vand.u32 2147483647, %v2364_v50  ;;  %v2454_v48 = vshrl.u32 %v248_v27, 5 }
  0xf2   :  { %v2445_v39 = vsub.s32 %v400_v10, %v403_v34  ;;  %v1232_v43 = vadd.s32 %v1231_v59, %v1227_v37  ;;  %v254_v49 = vshrl.u32 %v2235_v60, %v251_v38  ;;  %v257_v47 = vshrl.u32 %v2236_v62, %v251_v38 }
  0xf3   :  { %v260_v57 = vshrl.u32 %v2237_v0, %v251_v38  ;;  %v263_v61 = vshrl.u32 %v2238_v2, %v251_v38  ;;  %v2461_v40 = vadd.s32 4294967169, %v1072_v52  ;;  %v426_v41 = vsub.s32 4, %v402_v29 }
  0xf4   :  { %v406_v45 = vsub.s32 0, %v2445_v39  ;;  %v1233_v54 = vadd.s32 536870912, %v1232_v43  ;;  %v253_v1 = vshll.u32 %v2234_v56, %v250_v31  ;;  %v256_v3 = vshll.u32 %v2235_v60, %v250_v31 }
  0xf5   :  { %v259_v6 = vshll.u32 %v2236_v62, %v250_v31  ;;  %v262_v51 = vshll.u32 %v2237_v0, %v250_v31  ;;  %v266_v7 = vshrl.u32 %v2239_v9, %v251_v38  ;;  %v2479_v11 = vand.u32 8388607, %v1068_v53 }
  0xf6   :  { %v1954_v55 = vmin.u32 %v406_v45, %v2445_v39  ;;  %v2463_v63 = vshrl.u32 %v1233_v54, 30  ;;  %v255_v58 = vor.u32 %v254_v49, %v253_v1  ;;  %v258_v10 = vor.u32 %v257_v47, %v256_v3 }
  0xf7   :  { %v261_v26 = vor.u32 %v260_v57, %v259_v6  ;;  %v264_v13 = vor.u32 %v263_v61, %v262_v51  ;;  %v265_v14 = vshll.u32 %v2238_v2, %v250_v31  ;;  %v427_v15 = vsel %vm342_vm14, %v426_v41, %v402_v29 }
  0xf8   :  { %v408_v5 = vclz %v1954_v55  ;;  %v1235_v8 = vshll.u32 %v2463_v63, 30  ;;  %v252_v17 = vshrl.u32 %v2234_v56, %v251_v38  ;;  %vm268_vm0 = vcmp.lt.s32.totalorder %v2454_v48, 1 }
  0xf9   :  { %v267_v18 = vor.u32 %v266_v7, %v265_v14  ;;  %vm269_vm2 = vcmp.lt.s32.totalorder %v2454_v48, 2  ;;  %vm270_vm3 = vcmp.lt.s32.totalorder %v2454_v48, 3  ;;  %vm1174_vm4 = vcmp.lt.s32.totalorder %v2348_v24, 0 }
  0xfa   :  { %v1955_v12 = vadd.s32 4294967294, %v408_v5  ;;  %v2484_v16 = vsub.s32 %v1232_v43, %v1235_v8  ;;  %vm271_vm5 = vcmp.lt.s32.totalorder %v2454_v48, 4  ;;  %v276_v27 = vsel %vm268_vm0, %v255_v58, %v258_v10 }
  0xfb   :  { %v273_v31 = vsel %vm271_vm5, %v261_v26, 2102212464  ;;  %v277_v33 = vsel %vm271_vm5, %v264_v13, 920167782  ;;  %v280_v37 = vsel %vm268_vm0, %v258_v10, %v261_v26  ;;  %v281_v43 = vsel %vm271_vm5, %v267_v18, 1326507024 }
  0xfc   :  { %vm1956_vm1 = vcmp.lt.s32.totalorder %v1955_v12, 0  ;;  %v1238_v22 = vsub.s32 0, %v2484_v16  ;;  %v278_v36 = vsel %vm270_vm3, %v261_v26, %v277_v33  ;;  %v429_v45 = vsel %vm2469_vm15, 0, %v427_v15 }
  0xfd   :  { %v411_v21 = vsel %vm1956_vm1, 0, %v1955_v12  ;;  %v279_v52 = vsel %vm269_vm2, %v276_v27, %v278_v36  ;;  %vm2507_vm6 = vcmp.le.f32.partialorder %v1172_v28, 0.7853982  ;;  %v272_v49 = vsel %vm268_vm0, %v252_v17, %v255_v58 }
  0xfe   :  { %v412_v29 = vsub.s32 32, %v411_v21  ;;  %v416_v30 = vsub.s32 4294967266, %v411_v21  ;;  %v413_v34 = vshll.u32 %v2445_v39, %v411_v21  ;;  %v1986_v35 = vmin.u32 %v1238_v22, %v2484_v16 }
  0xff   :  { %v1258_v57 = vsub.s32 4, %v2463_v63  ;;  %v282_v61 = vsel %vm270_vm3, %v264_v13, %v281_v43  ;;  %v2521_v1 = vmul.u32.u64.low %v2451_v46, %v279_v52  ;;  %v2522_v3 = vmul.u32.u64.high %v2451_v46, %v279_v52, %v2521_v1 }
 0x100   :  { %v414_v38 = vshrl.u32 %v396_v44, %v412_v29  ;;  %v417_v59 = vadd.s32 127, %v416_v30  ;;  %v1240_v54 = vclz %v1986_v35  ;;  %v274_v44 = vsel %vm270_vm3, %v258_v10, %v273_v31  ;;  %v2046_v29 = vpop.f32.mrf.mxu0 }
 0x101   :  { %v283_v28 = vsel %vm269_vm2, %v280_v37, %v282_v61  ;;  %v275_v6 = vsel %vm269_vm2, %v272_v49, %v274_v44  ;;  %v433_v8 = vadd.s32 3, %v429_v45  ;;  %v1228_v58 = vadd.s32 %v2428_v19, %v2434_v25 }
 0x102   :  { %v415_v47 = vor.u32 %v414_v38, %v413_v34  ;;  %v418_v55 = vshll.u32 %v417_v59, 23  ;;  %v1987_v41 = vadd.s32 4294967294, %v1240_v54  ;;  %v1078_v10 = vadd.s32 1, %v2461_v40 }
 0x103   :  { %v2528_v51 = vmul.u32.u64.low %v2451_v46, %v283_v28  ;;  %v2529_v7 = vmul.u32.u64.high %v2451_v46, %v283_v28, %v2528_v51  ;;  %v1259_v14 = vsel %vm1174_vm4, %v1258_v57, %v2463_v63  ;;  %v291_v17 = vmul.u32 %v2451_v46, %v275_v6 }
 0x104   :  { %v419_v5 = vor.u32 4788187, %v418_v55  ;;  %vm1988_vm7 = vcmp.lt.s32.totalorder %v1987_v41, 0  ;;  %v422_v26 = vcvt.s32.f32 %v415_v47  ;;  %v294_v18 = vadd.s32 1, %v2522_v3 }
 0x105   :  { %v1243_v13 = vsel %vm1988_vm7, 0, %v1987_v41  ;;  %vm293_vm8 = vc.u32 %v2529_v7, %v2521_v1  ;;  %vm1079_vm9 = vcmp.gt.s32.totalorder %v1078_v10, 0  ;;  %v1261_v30 = vsel %vm2507_vm6, 0, %v1259_v14 }
 0x106   :  { %v420_v12 = vand.u32 2147483647, %v419_v5  ;;  %v1244_v48 = vsub.s32 32, %v1243_v13  ;;  %v1248_v15 = vsub.s32 4294967266, %v1243_v13  ;;  %v1245_v22 = vshll.u32 %v2484_v16, %v1243_v13 }
 0x107   :  { %v295_v40 = vsel %vm293_vm8, %v294_v18, %v2522_v3  ;;  %v1080_v27 = vsel %vm1079_vm9, %v1078_v10, 0  ;;  %v2548_v37 = vadd.f32 %v2046_v29, %v2342_v20  ;;  %v2553_v59 = vand.u32 3, %v433_v8 }
 0x108   :  { %v423_v21 = vmul.f32 %v422_v26, %v420_v12  ;;  %v1246_v19 = vshrl.u32 %v1228_v58, %v1244_v48  ;;  %v1249_v25 = vadd.s32 127, %v1248_v15  ;;  %v296_v46 = vadd.s32 %v295_v40, %v291_v17 }
 0x109   :  { %v1082_v31 = vand.u32 31, %v1080_v27  ;;  %v2555_v43 = vadd.s32 3, %v1261_v30  ;;  %v1076_v54 = vor.u32 8388608, %v2479_v11  ;;  %vm238_vm10 = vcmp.lt.s32.totalorder %v2357_v32, 0 }
 0x10a   :  { %v424_v63 = vxor.u32 2147483648, %v423_v21  ;;  %v1247_v33 = vor.u32 %v1246_v19, %v1245_v22  ;;  %v1250_v34 = vshll.u32 %v1249_v25, 23  ;;  %v297_v35 = vadd.s32 536870912, %v296_v46 }
 0x10b   :  { %v1083_v36 = vsub.s32 32, %v1082_v31  ;;  %v2561_v57 = vshrl.u32 %v1080_v27, 5  ;;  %v1085_v61 = vshll.u32 %v2234_v56, %v1082_v31  ;;  %v1088_v3 = vshll.u32 %v2235_v60, %v1082_v31 }
 0x10c   :  { %v425_v16 = vsel %vm342_vm14, %v424_v63, %v423_v21  ;;  %v1251_v52 = vor.u32 4788187, %v1250_v34  ;;  %v298_v45 = vshrl.u32 %v297_v35, 30  ;;  %v1254_v47 = vcvt.s32.f32 %v1247_v33 }
 0x10d   :  { %v428_v38 = vsel %vm2469_vm15, %v2345_v23, %v425_v16  ;;  %v1086_v49 = vshrl.u32 %v2235_v60, %v1083_v36  ;;  %v1089_v55 = vshrl.u32 %v2236_v62, %v1083_v36  ;;  %v1092_v41 = vshrl.u32 %v2237_v0, %v1083_v36 }
 0x10e   :  { %2146 = vcosq.f32 %v428_v38  ;;  %v1252_v44 = vand.u32 2147483647, %v1251_v52  ;;  %v299_v4 = vshll.u32 %v298_v45, 30  ;;  %v1094_v11 = vshll.u32 %v2237_v0, %v1082_v31 }
 0x10f   :  { %2148 = vsinq.f32 %v428_v38  ;;  %v1095_v5 = vshrl.u32 %v2238_v2, %v1083_v36  ;;  %v1087_v51 = vor.u32 %v1086_v49, %v1085_v61  ;;  %v1091_v8 = vshll.u32 %v2236_v62, %v1082_v31 }
 0x110   :  { %v1255_v28 = vmul.f32 %v1254_v47, %v1252_v44  ;;  %v2568_v6 = vsub.s32 %v296_v46, %v299_v4  ;;  %v551_v58 = vand.u32 2139095040, %v2548_v37  ;;  %v1090_v12 = vor.u32 %v1089_v55, %v1088_v3 }
 0x111   :  { %v1096_v26 = vor.u32 %v1095_v5, %v1094_v11  ;;  %v1098_v13 = vshrl.u32 %v2239_v9, %v1083_v36  ;;  %v292_v14 = vadd.s32 %v2521_v1, %v2529_v7  ;;  %v1093_v15 = vor.u32 %v1092_v41, %v1091_v8 }
 0x112   :  { %v1256_v10 = vxor.u32 2147483648, %v1255_v28  ;;  %v302_v48 = vsub.s32 0, %v2568_v6  ;;  %v1097_v17 = vshll.u32 %v2238_v2, %v1082_v31  ;;  %vm439_vm11 = vcmp.eq.s32.totalorder %v2553_v59, 2 }
 0x113   :  { %v322_v21 = vsub.s32 4, %v298_v45  ;;  %vm1100_vm12 = vcmp.lt.s32.totalorder %v2561_v57, 1  ;;  %v1116_v22 = vshll.u32 %v1076_v54, 8  ;;  %vm436_vm13 = vcmp.eq.s32.totalorder %v2553_v59, 0 }
 0x114   :  { %v1257_v18 = vsel %vm1174_vm4, %v1256_v10, %v1255_v28  ;;  %v1950_v7 = vmin.u32 %v302_v48, %v2568_v6  ;;  %v1099_v19 = vor.u32 %v1098_v13, %v1097_v17  ;;  %vm1103_vm14 = vcmp.lt.s32.totalorder %v2561_v57, 4 }
 0x115   :  { %v1260_v1 = vsel %vm2507_vm6, %v2348_v24, %v1257_v18  ;;  %vm435_vm15 = vcmp.lt.s32.totalorder %v2553_v59, 2  ;;  %v1084_v25 = vshrl.u32 %v2234_v56, %v1083_v36  ;;  %v1108_v40 = vsel %vm1100_vm12, %v1087_v51, %v1090_v12 }
 0x116   :  { %2150 = vcosq.f32 %v1260_v1  ;;  %v1109_v27 = vsel %vm1103_vm14, %v1096_v26, 920167782  ;;  %vm432_vm0 = vweird.f32 %v2345_v23  ;;  %vm2596_vm1 = vcmp.le.f32.partialorder %v236_v42, 0.7853982 }
 0x117   :  { %2152 = vsinq.f32 %v1260_v1  ;;  %v304_v29 = vclz %v1950_v7  ;;  %vm1102_vm2 = vcmp.lt.s32.totalorder %v2561_v57, 3  ;;  %v1105_v63 = vsel %vm1103_vm14, %v1093_v15, 2102212464 }
 0x118   :  { %v323_v30 = vsel %vm238_vm10, %v322_v21, %v298_v45  ;;  %vm1101_vm3 = vcmp.lt.s32.totalorder %v2561_v57, 2  ;;  %v1110_v46 = vsel %vm1102_vm2, %v1093_v15, %v1109_v27  ;;  %v1112_v31 = vsel %vm1100_vm12, %v1090_v12, %v1093_v15 }
 0x119   :  { %v1951_v33 = vadd.s32 4294967294, %v304_v29  ;;  %v1104_v42 = vsel %vm1100_vm12, %v1084_v25, %v1087_v51  ;;  %v1111_v34 = vsel %vm1101_vm3, %v1108_v40, %v1110_v46  ;;  %v1113_v16 = vsel %vm1103_vm14, %v1099_v19, 1326507024 }
 0x11a   :  { %v1106_v36 = vsel %vm1102_vm2, %v1090_v12, %v1105_v63  ;;  %v1114_v38 = vsel %vm1102_vm2, %v1096_v26, %v1113_v16  ;;  %v2614_v52 = vmul.u32.u64.low %v1116_v22, %v1111_v34  ;;  %v2615_v45 = vmul.u32.u64.high %v1116_v22, %v1111_v34, %v2614_v52 }
 0x11b   :  { %v2147_v35 = vpop.eup %2146  ;;  %vm1952_vm4 = vcmp.lt.s32.totalorder %v1951_v33, 0  ;;  %v1115_v44 = vsel %vm1101_vm3, %v1112_v31, %v1114_v38  ;;  %v552_v47 = vshrl.u32 %v551_v58, 23  ;;  %v1107_v5 = vsel %vm1101_vm3, %v1104_v42, %v1106_v36 }
 0x11c   :  { %v2149_v54 = vpop.eup %2148  ;;  %v440_v49 = vxor.u32 2147483648, %v2147_v35  ;;  %v307_v4 = vsel %vm1952_vm4, 0, %v1951_v33  ;;  %v2620_v61 = vmul.u32.u64.low %v1116_v22, %v1115_v44  ;;  %v2621_v41 = vmul.u32.u64.high %v1116_v22, %v1115_v44, %v2620_v61 }
 0x11d   :  { %v437_v55 = vxor.u32 2147483648, %v2149_v54  ;;  %v308_v3 = vsub.s32 32, %v307_v4  ;;  %v312_v11 = vsub.s32 4294967266, %v307_v4  ;;  %v1266_v8 = vand.u32 3, %v2555_v43  ;;  %v2058_v43 = vpop.f32.mrf.mxu1 }
 0x11e   :  { %v441_v28 = vsel %vm439_vm11, %v440_v49, %v2149_v54  ;;  %v1126_v58 = vadd.s32 1, %v2615_v45  ;;  %v1961_v10 = vadd.s32 4294967169, %v552_v47  ;;  %v309_v26 = vshll.u32 %v2568_v6, %v307_v4 }
 0x11f   :  { %v438_v51 = vsel %vm436_vm13, %v2147_v35, %v437_v55  ;;  %v310_v13 = vshrl.u32 %v292_v14, %v308_v3  ;;  %v313_v48 = vadd.s32 127, %v312_v11  ;;  %v325_v57 = vsel %vm2596_vm1, 0, %v323_v30 }
 0x120   :  { %v442_v12 = vsel %vm435_vm15, %v438_v51, %v441_v28  ;;  %v1123_v17 = vmul.u32 %v1116_v22, %v1107_v5  ;;  %vm1125_vm5 = vc.u32 %v2621_v41, %v2614_v52  ;;  %v558_v1 = vadd.s32 1, %v1961_v10 }
 0x121   :  { %v443_v15 = vsel %vm432_vm0, nan, %v442_v12  ;;  %v311_v18 = vor.u32 %v310_v13, %v309_v26  ;;  %v314_v21 = vshll.u32 %v313_v48, 23  ;;  %v1127_v59 = vsel %vm1125_vm5, %v1126_v58, %v2615_v45 }
 0x122   :  { %1901 = vst [vmem:[#allocation2 + $0x8] sm:$0xff] %v443_v15  ;;  %v1128_v6 = vadd.s32 %v1127_v59, %v1123_v17  ;;  %v548_v14 = vand.u32 2147483647, %v2548_v37  ;;  %vm1271_vm6 = vcmp.eq.s32.totalorder %v1266_v8, 2  ;;  %vm559_vm7 = vcmp.gt.s32.totalorder %v558_v1, 0 }
 0x123   :  { %v2151_v7 = vpop.eup %2150  ;;  %v315_v23 = vor.u32 4788187, %v314_v21  ;;  %v2643_v19 = vadd.f32 %v2058_v43, %v2342_v20  ;;  %v329_v40 = vadd.s32 3, %v325_v57  ;;  %v560_v29 = vsel %vm559_vm7, %v558_v1, 0 }
 0x124   :  { %v2153_v22 = vpop.eup %2152  ;;  %v1272_v25 = vxor.u32 2147483648, %v2151_v7  ;;  %v1129_v27 = vadd.s32 536870912, %v1128_v6  ;;  %v318_v46 = vcvt.s32.f32 %v311_v18  ;;  %v562_v31 = vand.u32 31, %v560_v29 }
 0x125   :  { %v1269_v63 = vxor.u32 2147483648, %v2153_v22  ;;  %v316_v30 = vand.u32 2147483647, %v315_v23  ;;  %vm1268_vm8 = vcmp.eq.s32.totalorder %v1266_v8, 0  ;;  %v555_v34 = vand.u32 8388607, %v548_v14 }
 0x126   :  { %v1273_v33 = vsel %vm1271_vm6, %v1272_v25, %v2153_v22  ;;  %v2645_v42 = vshrl.u32 %v1129_v27, 30  ;;  %vm1267_vm9 = vcmp.lt.s32.totalorder %v1266_v8, 2  ;;  %v563_v36 = vsub.s32 32, %v562_v31 }
 0x127   :  { %v1270_v16 = vsel %vm1268_vm8, %v2151_v7, %v1269_v63  ;;  %v319_v35 = vmul.f32 %v318_v46, %v316_v30  ;;  %vm1264_vm11 = vweird.f32 %v2348_v24  ;;  %v2651_v44 = vand.u32 3, %v329_v40 }
 0x128   :  { %v1274_v38 = vsel %vm1267_vm9, %v1270_v16, %v1273_v33  ;;  %v1131_v45 = vshll.u32 %v2645_v42, 30  ;;  %v566_v47 = vshrl.u32 %v2235_v60, %v563_v36  ;;  %v556_v4 = vor.u32 8388608, %v555_v34 }
 0x129   :  { %v1275_v54 = vsel %vm1264_vm11, nan, %v1274_v38  ;;  %v320_v49 = vxor.u32 2147483648, %v319_v35  ;;  %v569_v61 = vshrl.u32 %v2236_v62, %v563_v36  ;;  %v1383_v28 = vand.u32 2139095040, %v2643_v19 }
 0x12a   :  { %1909 = vst [vmem:[#allocation2 + $0x48] sm:$0xff] %v1275_v54  ;;  %v2654_v55 = vsub.s32 %v1128_v6, %v1131_v45  ;;  %v561_v3 = vshrl.u32 %v560_v29, 5  ;;  %v565_v11 = vshll.u32 %v2234_v56, %v562_v31  ;;  %v572_v5 = vshrl.u32 %v2237_v0, %v563_v36 }
 0x12b   :  { %v321_v24 = vsel %vm238_vm10, %v320_v49, %v319_v35  ;;  %v568_v58 = vshll.u32 %v2235_v60, %v562_v31  ;;  %v571_v10 = vshll.u32 %v2236_v62, %v562_v31  ;;  %v574_v26 = vshll.u32 %v2237_v0, %v562_v31 }
 0x12c   :  { %v324_v51 = vsel %vm2596_vm1, %v2357_v32, %v321_v24  ;;  %v1134_v8 = vsub.s32 0, %v2654_v55  ;;  %v567_v12 = vor.u32 %v566_v47, %v565_v11  ;;  %v575_v13 = vshrl.u32 %v2238_v2, %v563_v36 }
 0x12d   :  { %2154 = vcosq.f32 %v324_v51  ;;  %v570_v15 = vor.u32 %v569_v61, %v568_v58  ;;  %v573_v57 = vor.u32 %v572_v5, %v571_v10  ;;  %v577_v39 = vshll.u32 %v2238_v2, %v562_v31 }
 0x12e   :  { %2156 = vsinq.f32 %v324_v51  ;;  %v1982_v48 = vmin.u32 %v1134_v8, %v2654_v55  ;;  %v576_v17 = vor.u32 %v575_v13, %v574_v26  ;;  %v578_v43 = vshrl.u32 %v2239_v9, %v563_v36 }
 0x12f   :  { %v596_v18 = vshll.u32 %v556_v4, 8  ;;  %v564_v59 = vshrl.u32 %v2234_v56, %v563_v36  ;;  %vm580_vm10 = vcmp.lt.s32.totalorder %v561_v3, 1  ;;  %v1384_v1 = vshrl.u32 %v1383_v28, 23 }
 0x130   :  { %v1136_v21 = vclz %v1982_v48  ;;  %vm1070_vm12 = vcmp.lt.s32.totalorder %v2364_v50, 0  ;;  %v579_v6 = vor.u32 %v578_v43, %v577_v39  ;;  %vm581_vm13 = vcmp.lt.s32.totalorder %v561_v3, 2 }
 0x131   :  { %vm582_vm14 = vcmp.lt.s32.totalorder %v561_v3, 3  ;;  %vm583_vm15 = vcmp.lt.s32.totalorder %v561_v3, 4  ;;  %v588_v22 = vsel %vm580_vm10, %v567_v12, %v570_v15  ;;  %v584_v40 = vsel %vm580_vm10, %v564_v59, %v567_v12 }
 0x132   :  { %v1983_v7 = vadd.s32 4294967294, %v1136_v21  ;;  %v585_v23 = vsel %vm583_vm15, %v573_v57, 2102212464  ;;  %v589_v25 = vsel %vm583_vm15, %v576_v17, 920167782  ;;  %v592_v29 = vsel %vm580_vm10, %v570_v15, %v573_v57 }
 0x133   :  { %v590_v27 = vsel %vm582_vm14, %v573_v57, %v589_v25  ;;  %v593_v63 = vsel %vm583_vm15, %v579_v6, 1326507024  ;;  %vm2677_vm0 = vcmp.le.f32.partialorder %v1068_v53, 0.7853982  ;;  %v586_v46 = vsel %vm582_vm14, %v570_v15, %v585_v23 }
 0x134   :  { %vm1984_vm1 = vcmp.lt.s32.totalorder %v1983_v7, 0  ;;  %v591_v31 = vsel %vm581_vm13, %v588_v22, %v590_v27  ;;  %v594_v33 = vsel %vm582_vm14, %v576_v17, %v593_v63  ;;  %v1124_v38 = vadd.s32 %v2614_v52, %v2621_v41 }
 0x135   :  { %v1139_v34 = vsel %vm1984_vm1, 0, %v1983_v7  ;;  %v595_v16 = vsel %vm581_vm13, %v592_v29, %v594_v33  ;;  %v2683_v35 = vmul.u32.u64.low %v596_v18, %v591_v31  ;;  %v2684_v36 = vmul.u32.u64.high %v596_v18, %v591_v31, %v2683_v35 }
 0x136   :  { %v1140_v45 = vsub.s32 32, %v1139_v34  ;;  %v1144_v53 = vsub.s32 4294967266, %v1139_v34  ;;  %v1154_v54 = vsub.s32 4, %v2645_v42  ;;  %v1380_v4 = vand.u32 2147483647, %v2643_v19 }
 0x137   :  { %v2690_v49 = vmul.u32.u64.low %v596_v18, %v595_v16  ;;  %v2691_v47 = vmul.u32.u64.high %v596_v18, %v595_v16, %v2690_v49  ;;  %v1993_v61 = vadd.s32 4294967169, %v1384_v1  ;;  %v1141_v28 = vshll.u32 %v2654_v55, %v1139_v34  ;;  %v167_v1 = vpop.f32.mrf.mxu0 }
 0x138   :  { %v1142_v24 = vshrl.u32 %v1124_v38, %v1140_v45  ;;  %v1145_v11 = vadd.s32 127, %v1144_v53  ;;  %v587_v5 = vsel %vm581_vm13, %v584_v40, %v586_v46  ;;  %vm331_vm2 = vcmp.lt.s32.totalorder %v2651_v44, 2 }
 0x139   :  { %vm332_vm3 = vcmp.eq.s32.totalorder %v2651_v44, 0  ;;  %v606_v52 = vadd.s32 1, %v2684_v36  ;;  %v1390_v41 = vadd.s32 1, %v1993_v61  ;;  %vm335_vm4 = vcmp.eq.s32.totalorder %v2651_v44, 2 }
 0x13a   :  { %v2155_v51 = vpop.eup %2154  ;;  %v1143_v8 = vor.u32 %v1142_v24, %v1141_v28  ;;  %v1146_v58 = vshll.u32 %v1145_v11, 23  ;;  %v1155_v55 = vsel %vm1070_vm12, %v1154_v54, %v2645_v42  ;;  %v603_v3 = vmul.u32 %v596_v18, %v587_v5 }
 0x13b   :  { %v2157_v10 = vpop.eup %2156  ;;  %v336_v12 = vxor.u32 2147483648, %v2155_v51  ;;  %vm605_vm5 = vc.u32 %v2691_v47, %v2683_v35  ;;  %vm1391_vm6 = vcmp.gt.s32.totalorder %v1390_v41, 0  ;;  %v1387_v15 = vand.u32 8388607, %v1380_v4 }
 0x13c   :  { %v333_v26 = vxor.u32 2147483648, %v2157_v10  ;;  %v1147_v13 = vor.u32 4788187, %v1146_v58  ;;  %v607_v48 = vsel %vm605_vm5, %v606_v52, %v2684_v36  ;;  %v1157_v17 = vsel %vm2677_vm0, 0, %v1155_v55 }
 0x13d   :  { %v337_v57 = vsel %vm335_vm4, %v336_v12, %v2157_v10  ;;  %v608_v39 = vadd.s32 %v607_v48, %v603_v3  ;;  %v1392_v42 = vsel %vm1391_vm6, %v1390_v41, 0  ;;  %v1150_v21 = vcvt.s32.f32 %v1143_v8 }
 0x13e   :  { %v334_v43 = vsel %vm332_vm3, %v2155_v51, %v333_v26  ;;  %v1148_v18 = vand.u32 2147483647, %v1147_v13  ;;  %v1394_v59 = vand.u32 31, %v1392_v42  ;;  %vm328_vm7 = vweird.f32 %v2357_v32 }
 0x13f   :  { %v338_v6 = vsel %vm331_vm2, %v334_v43, %v337_v57  ;;  %v609_v7 = vadd.s32 536870912, %v608_v39  ;;  %v1161_v25 = vadd.s32 3, %v1157_v17  ;;  %v1388_v29 = vor.u32 8388608, %v1387_v15 }
 0x140   :  { %v339_v23 = vsel %vm328_vm7, nan, %v338_v6  ;;  %v1151_v22 = vmul.f32 %v1150_v21, %v1148_v18  ;;  %v1395_v40 = vsub.s32 32, %v1394_v59  ;;  %v1397_v63 = vshll.u32 %v2234_v56, %v1394_v59 }
 0x141   :  { %1900 = vst [vmem:[#allocation2] sm:$0xff] %v339_v23  ;;  %v2715_v27 = vshrl.u32 %v609_v7, 30  ;;  %v2719_v46 = vadd.f32 %v2342_v20, %v167_v1  ;;  %v1400_v44 = vshll.u32 %v2235_v60, %v1394_v59  ;;  %v1403_v16 = vshll.u32 %v2236_v62, %v1394_v59 }
 0x142   :  { %v1152_v31 = vxor.u32 2147483648, %v1151_v22  ;;  %v1398_v32 = vshrl.u32 %v2235_v60, %v1395_v40  ;;  %v1401_v33 = vshrl.u32 %v2236_v62, %v1395_v40  ;;  %v1404_v36 = vshrl.u32 %v2237_v0, %v1395_v40 }
 0x143   :  { %v611_v34 = vshll.u32 %v2715_v27, 30  ;;  %v1407_v38 = vshrl.u32 %v2238_v2, %v1395_v40  ;;  %v1393_v20 = vshrl.u32 %v1392_v42, 5  ;;  %v1406_v54 = vshll.u32 %v2237_v0, %v1394_v59 }
 0x144   :  { %v1153_v45 = vsel %vm1070_vm12, %v1152_v31, %v1151_v22  ;;  %v1399_v53 = vor.u32 %v1398_v32, %v1397_v63  ;;  %v1402_v28 = vor.u32 %v1401_v33, %v1400_v44  ;;  %v1405_v24 = vor.u32 %v1404_v36, %v1403_v16 }
 0x145   :  { %v1156_v49 = vsel %vm2677_vm0, %v2364_v50, %v1153_v45  ;;  %v2734_v61 = vsub.s32 %v608_v39, %v611_v34  ;;  %v1408_v11 = vor.u32 %v1407_v38, %v1406_v54  ;;  %v1409_v5 = vshll.u32 %v2238_v2, %v1394_v59 }
 0x146   :  { %2158 = vcosq.f32 %v1156_v49  ;;  %v1410_v52 = vshrl.u32 %v2239_v9, %v1395_v40  ;;  %v2738_v41 = vand.u32 3, %v1161_v25  ;;  %vm550_vm8 = vcmp.lt.s32.totalorder %v2548_v37, 0 }
 0x147   :  { %2160 = vsinq.f32 %v1156_v49  ;;  %v614_v51 = vsub.s32 0, %v2734_v61  ;;  %vm1415_vm9 = vcmp.lt.s32.totalorder %v1393_v20, 4  ;;  %v1428_v30 = vshll.u32 %v1388_v29, 8 }
 0x148   :  { %v1411_v8 = vor.u32 %v1410_v52, %v1409_v5  ;;  %v447_v58 = vand.u32 2139095040, %v2719_v46  ;;  %v1396_v10 = vshrl.u32 %v2234_v56, %v1395_v40  ;;  %vm1412_vm11 = vcmp.lt.s32.totalorder %v1393_v20, 1 }
 0x149   :  { %v1962_v55 = vmin.u32 %v614_v51, %v2734_v61  ;;  %v1417_v12 = vsel %vm1415_vm9, %v1405_v24, 2102212464  ;;  %vm1413_vm10 = vcmp.lt.s32.totalorder %v1393_v20, 2  ;;  %v1420_v3 = vsel %vm1412_vm11, %v1399_v53, %v1402_v28 }
 0x14a   :  { %v1421_v26 = vsel %vm1415_vm9, %v1408_v11, 920167782  ;;  %v444_v13 = vand.u32 2147483647, %v2719_v46  ;;  %vm1414_vm12 = vcmp.lt.s32.totalorder %v1393_v20, 3  ;;  %v1416_v15 = vsel %vm1412_vm11, %v1396_v10, %v1399_v53 }
 0x14b   :  { %v616_v48 = vclz %v1962_v55  ;;  %v1424_v57 = vsel %vm1412_vm11, %v1402_v28, %v1405_v24  ;;  %v1418_v17 = vsel %vm1414_vm12, %v1402_v28, %v1417_v12  ;;  %v1422_v39 = vsel %vm1414_vm12, %v1405_v24, %v1421_v26 }
 0x14c   :  { %v1425_v42 = vsel %vm1415_vm9, %v1411_v8, 1326507024  ;;  %v448_v43 = vshrl.u32 %v447_v58, 23  ;;  %v634_v21 = vsub.s32 4, %v2715_v27  ;;  %v1423_v59 = vsel %vm1413_vm10, %v1420_v3, %v1422_v39 }
 0x14d   :  { %v1963_v18 = vadd.s32 4294967294, %v616_v48  ;;  %v1426_v1 = vsel %vm1414_vm12, %v1408_v11, %v1425_v42  ;;  %v2752_v7 = vmul.u32.u64.low %v1428_v30, %v1423_v59  ;;  %v2753_v23 = vmul.u32.u64.high %v1428_v30, %v1423_v59, %v2752_v7 }
 0x14e   :  { %v1427_v6 = vsel %vm1413_vm10, %v1424_v57, %v1426_v1  ;;  %v1957_v22 = vadd.s32 4294967169, %v448_v43  ;;  %v1419_v25 = vsel %vm1413_vm10, %v1416_v15, %v1418_v17  ;;  %vm1160_vm14 = vweird.f32 %v2364_v50 }
 0x14f   :  { %vm1964_vm13 = vcmp.lt.s32.totalorder %v1963_v18, 0  ;;  %v2757_v40 = vmul.u32.u64.low %v1428_v30, %v1427_v6  ;;  %v2758_v29 = vmul.u32.u64.high %v1428_v30, %v1427_v6, %v2757_v40  ;;  %vm1167_vm15 = vcmp.eq.s32.totalorder %v2738_v41, 2 }
 0x150   :  { %vm2764_vm0 = vcmp.le.f32.partialorder %v548_v14, 0.7853982  ;;  %v619_v31 = vsel %vm1964_vm13, 0, %v1963_v18  ;;  %v454_v32 = vadd.s32 1, %v1957_v22  ;;  %v604_v44 = vadd.s32 %v2683_v35, %v2691_v47  ;;  %v207_v35 = vpop.f32.mrf.mxu1 }
 0x151   :  { %v620_v33 = vsub.s32 32, %v619_v31  ;;  %v624_v34 = vsub.s32 4294967266, %v619_v31  ;;  %v635_v16 = vsel %vm550_vm8, %v634_v21, %v2715_v27  ;;  %v1435_v36 = vmul.u32 %v1428_v30, %v1419_v25  ;;  %v2788_v30 = vld [vmem:[%s3462_s2] ss:$0 sm:$0xff] }
 0x152   :  { %v1438_v38 = vadd.s32 1, %v2753_v23  ;;  %v451_v14 = vand.u32 8388607, %v444_v13  ;;  %vm455_vm1 = vcmp.gt.s32.totalorder %v454_v32, 0  ;;  %v621_v20 = vshll.u32 %v2734_v61, %v619_v31 }
 0x153   :  { %v2159_v45 = vpop.eup %2158  ;;  %v622_v53 = vshrl.u32 %v604_v44, %v620_v33  ;;  %v625_v54 = vadd.s32 127, %v624_v34  ;;  %vm1437_vm2 = vc.u32 %v2758_v29, %v2752_v7  ;;  %v637_v27 = vsel %vm2764_vm0, 0, %v635_v16 }
 0x154   :  { %v2161_v47 = vpop.eup %2160  ;;  %v1168_v49 = vxor.u32 2147483648, %v2159_v45  ;;  %v1439_v28 = vsel %vm1437_vm2, %v1438_v38, %v2753_v23  ;;  %v456_v24 = vsel %vm455_vm1, %v454_v32, 0  ;;  %vm1164_vm3 = vcmp.eq.s32.totalorder %v2738_v41, 0 }
 0x155   :  { %v1165_v11 = vxor.u32 2147483648, %v2161_v47  ;;  %v623_v5 = vor.u32 %v622_v53, %v621_v20  ;;  %v626_v52 = vshll.u32 %v625_v54, 23  ;;  %v1440_v51 = vadd.s32 %v1439_v28, %v1435_v36 }
 0x156   :  { %v1169_v61 = vsel %vm1167_vm15, %v1168_v49, %v2161_v47  ;;  %v458_v8 = vand.u32 31, %v456_v24  ;;  %v2791_v58 = vadd.f32 %v2788_v30, %v207_v35  ;;  %vm1163_vm4 = vcmp.lt.s32.totalorder %v2738_v41, 2 }
 0x157   :  { %v1166_v55 = vsel %vm1164_vm3, %v2159_v45, %v1165_v11  ;;  %v627_v10 = vor.u32 4788187, %v626_v52  ;;  %v1441_v12 = vadd.s32 536870912, %v1440_v51  ;;  %v2794_v26 = vadd.s32 3, %v637_v27 }
 0x158   :  { %v1170_v3 = vsel %vm1163_vm4, %v1166_v55, %v1169_v61  ;;  %v452_v48 = vor.u32 8388608, %v451_v14  ;;  %v459_v15 = vsub.s32 32, %v458_v8  ;;  %v630_v39 = vcvt.s32.f32 %v623_v5 }
 0x159   :  { %v1171_v57 = vsel %vm1160_vm14, nan, %v1170_v3  ;;  %v628_v17 = vand.u32 2147483647, %v627_v10  ;;  %v2798_v42 = vshrl.u32 %v1441_v12, 30  ;;  %v1279_v21 = vand.u32 2139095040, %v2791_v58 }
 0x15a   :  { %1908 = vst [vmem:[#allocation2 + $0x40] sm:$0xff] %v1171_v57  ;;  %v462_v43 = vshrl.u32 %v2235_v60, %v459_v15  ;;  %v465_v41 = vshrl.u32 %v2236_v62, %v459_v15  ;;  %v468_v18 = vshrl.u32 %v2237_v0, %v459_v15  ;;  %v461_v6 = vshll.u32 %v2234_v56, %v458_v8 }
 0x15b   :  { %v631_v59 = vmul.f32 %v630_v39, %v628_v17  ;;  %v1443_v1 = vshll.u32 %v2798_v42, 30  ;;  %v464_v50 = vshll.u32 %v2235_v60, %v458_v8  ;;  %v457_v23 = vshrl.u32 %v456_v24, 5 }
 0x15c   :  { %v467_v22 = vshll.u32 %v2236_v62, %v458_v8  ;;  %v470_v25 = vshll.u32 %v2237_v0, %v458_v8  ;;  %v471_v40 = vshrl.u32 %v2238_v2, %v459_v15  ;;  %v463_v44 = vor.u32 %v462_v43, %v461_v6 }
 0x15d   :  { %v632_v31 = vxor.u32 2147483648, %v631_v59  ;;  %v2810_v32 = vsub.s32 %v1440_v51, %v1443_v1  ;;  %v466_v33 = vor.u32 %v465_v41, %v464_v50  ;;  %v473_v36 = vshll.u32 %v2238_v2, %v458_v8 }
 0x15e   :  { %v469_v34 = vor.u32 %v468_v18, %v467_v22  ;;  %v472_v16 = vor.u32 %v471_v40, %v470_v25  ;;  %v474_v38 = vshrl.u32 %v2239_v9, %v459_v15  ;;  %v492_v20 = vshll.u32 %v452_v48, 8 }
 0x15f   :  { %v633_v14 = vsel %vm550_vm8, %v632_v31, %v631_v59  ;;  %v1446_v45 = vsub.s32 0, %v2810_v32  ;;  %v1276_v53 = vand.u32 2147483647, %v2791_v58  ;;  %v460_v35 = vshrl.u32 %v2234_v56, %v459_v15 }
 0x160   :  { %v636_v54 = vsel %vm2764_vm0, %v2548_v37, %v633_v14  ;;  %v475_v47 = vor.u32 %v474_v38, %v473_v36  ;;  %v1280_v49 = vshrl.u32 %v1279_v21, 23  ;;  %vm476_vm5 = vcmp.lt.s32.totalorder %v457_v23, 1 }
 0x161   :  { %2162 = vcosq.f32 %v636_v54  ;;  %v1994_v27 = vmin.u32 %v1446_v45, %v2810_v32  ;;  %vm479_vm6 = vcmp.lt.s32.totalorder %v457_v23, 4  ;;  %v484_v24 = vsel %vm476_vm5, %v463_v44, %v466_v33 }
 0x162   :  { %2164 = vsinq.f32 %v636_v54  ;;  %v481_v28 = vsel %vm479_vm6, %v469_v34, 2102212464  ;;  %v485_v11 = vsel %vm479_vm6, %v472_v16, 920167782  ;;  %vm477_vm7 = vcmp.lt.s32.totalorder %v457_v23, 2 }
 0x163   :  { %v1448_v5 = vclz %v1994_v27  ;;  %vm478_vm8 = vcmp.lt.s32.totalorder %v457_v23, 3  ;;  %v480_v52 = vsel %vm476_vm5, %v460_v35, %v463_v44  ;;  %v488_v61 = vsel %vm476_vm5, %v466_v33, %v469_v34  ;;  %v2049_v35 = vpop.f32.mrf.mxu0 }
 0x164   :  { %v482_v51 = vsel %vm478_vm8, %v466_v33, %v481_v28  ;;  %v486_v63 = vsel %vm478_vm8, %v469_v34, %v485_v11  ;;  %v489_v8 = vsel %vm479_vm6, %v475_v47, 1326507024  ;;  %v1466_v10 = vsub.s32 4, %v2798_v42 }
 0x165   :  { %v1995_v55 = vadd.s32 4294967294, %v1448_v5  ;;  %v487_v12 = vsel %vm477_vm7, %v484_v24, %v486_v63  ;;  %v490_v3 = vsel %vm478_vm8, %v472_v16, %v489_v8  ;;  %v483_v48 = vsel %vm477_vm7, %v480_v52, %v482_v51 }
 0x166   :  { %v491_v15 = vsel %vm477_vm7, %v488_v61, %v490_v3  ;;  %v2824_v57 = vmul.u32.u64.low %v492_v20, %v487_v12  ;;  %v2825_v17 = vmul.u32.u64.high %v492_v20, %v487_v12, %v2824_v57  ;;  %v1989_v41 = vadd.s32 4294967169, %v1280_v49 }
 0x167   :  { %vm1996_vm9 = vcmp.lt.s32.totalorder %v1995_v55, 0  ;;  %v2827_v39 = vmul.u32.u64.low %v492_v20, %v491_v15  ;;  %v2828_v43 = vmul.u32.u64.high %v492_v20, %v491_v15, %v2827_v39  ;;  %vm2832_vm11 = vcmp.le.f32.partialorder %v1380_v4, 0.7853982 }
 0x168   :  { %vm1382_vm10 = vcmp.lt.s32.totalorder %v2643_v19, 0  ;;  %v1436_v21 = vadd.s32 %v2752_v7, %v2758_v29  ;;  %v1451_v59 = vsel %vm1996_vm9, 0, %v1995_v55  ;;  %v1286_v23 = vadd.s32 1, %v1989_v41 }
 0x169   :  { %v1452_v1 = vsub.s32 32, %v1451_v59  ;;  %v1456_v6 = vsub.s32 4294967266, %v1451_v59  ;;  %v1467_v50 = vsel %vm1382_vm10, %v1466_v10, %v2798_v42  ;;  %v642_v22 = vand.u32 3, %v2794_v26 }
 0x16a   :  { %v499_v25 = vmul.u32 %v492_v20, %v483_v48  ;;  %v502_v4 = vadd.s32 1, %v2825_v17  ;;  %v1283_v40 = vand.u32 8388607, %v1276_v53  ;;  %v1453_v31 = vshll.u32 %v2810_v32, %v1451_v59 }
 0x16b   :  { %v1454_v44 = vshrl.u32 %v1436_v21, %v1452_v1  ;;  %v1457_v7 = vadd.s32 127, %v1456_v6  ;;  %vm501_vm12 = vc.u32 %v2828_v43, %v2824_v57  ;;  %v1469_v29 = vsel %vm2832_vm11, 0, %v1467_v50 }
 0x16c   :  { %v503_v42 = vsel %vm501_vm12, %v502_v4, %v2825_v17  ;;  %vm1287_vm13 = vcmp.gt.s32.totalorder %v1286_v23, 0  ;;  %vm640_vm14 = vweird.f32 %v2548_v37  ;;  %vm643_vm15 = vcmp.lt.s32.totalorder %v642_v22, 2 }
 0x16d   :  { %v1455_v33 = vor.u32 %v1454_v44, %v1453_v31  ;;  %v1458_v26 = vshll.u32 %v1457_v7, 23  ;;  %v504_v34 = vadd.s32 %v503_v42, %v499_v25  ;;  %v1288_v16 = vsel %vm1287_vm13, %v1286_v23, 0 }
 0x16e   :  { %v2163_v36 = vpop.eup %2162  ;;  %vm644_vm0 = vcmp.eq.s32.totalorder %v642_v22, 0  ;;  %v1290_v32 = vand.u32 31, %v1288_v16  ;;  %v1284_v54 = vor.u32 8388608, %v1283_v40  ;;  %vm647_vm1 = vcmp.eq.s32.totalorder %v642_v22, 2 }
 0x16f   :  { %v2165_v38 = vpop.eup %2164  ;;  %v648_v14 = vxor.u32 2147483648, %v2163_v36  ;;  %v1459_v45 = vor.u32 4788187, %v1458_v26  ;;  %v505_v20 = vadd.s32 536870912, %v504_v34  ;;  %v2852_v49 = vadd.s32 3, %v1469_v29 }
 0x170   :  { %v645_v47 = vxor.u32 2147483648, %v2165_v38  ;;  %v1291_v27 = vsub.s32 32, %v1290_v32  ;;  %v1462_v11 = vcvt.s32.f32 %v1455_v33  ;;  %v2856_v51 = vadd.s32 %v2824_v57, %v2828_v43 }
 0x171   :  { %v649_v28 = vsel %vm647_vm1, %v648_v14, %v2165_v38  ;;  %v1460_v24 = vand.u32 2147483647, %v1459_v45  ;;  %v506_v5 = vshrl.u32 %v505_v20, 30  ;;  %v2860_v61 = vadd.f32 %v2788_v30, %v2049_v35 }
 0x172   :  { %v646_v52 = vsel %vm644_vm0, %v2163_v36, %v645_v47  ;;  %v1294_v63 = vshrl.u32 %v2235_v60, %v1291_v27  ;;  %v2863_v12 = vshll.u32 %v1284_v54, 8  ;;  %v1293_v48 = vshll.u32 %v2234_v56, %v1290_v32 }
 0x173   :  { %v650_v8 = vsel %vm643_vm15, %v646_v52, %v649_v28  ;;  %v1463_v55 = vmul.f32 %v1462_v11, %v1460_v24  ;;  %v507_v10 = vshll.u32 %v506_v5, 30  ;;  %v1297_v15 = vshrl.u32 %v2236_v62, %v1291_v27 }
 0x174   :  { %v651_v3 = vsel %vm640_vm14, nan, %v650_v8  ;;  %v1300_v57 = vshrl.u32 %v2237_v0, %v1291_v27  ;;  %v1289_v43 = vshrl.u32 %v1288_v16, 5  ;;  %v1296_v41 = vshll.u32 %v2235_v60, %v1290_v32 }
 0x175   :  { %1903 = vst [vmem:[#allocation2 + $0x18] sm:$0xff] %v651_v3  ;;  %v1464_v17 = vxor.u32 2147483648, %v1463_v55  ;;  %v2870_v39 = vsub.s32 %v504_v34, %v507_v10  ;;  %v1295_v21 = vor.u32 %v1294_v63, %v1293_v48  ;;  %v1299_v59 = vshll.u32 %v2236_v62, %v1290_v32 }
 0x176   :  { %v1302_v1 = vshll.u32 %v2237_v0, %v1290_v32  ;;  %v1303_v37 = vshrl.u32 %v2238_v2, %v1291_v27  ;;  %vm446_vm2 = vcmp.lt.s32.totalorder %v2719_v46, 0  ;;  %v1305_v23 = vshll.u32 %v2238_v2, %v1290_v32 }
 0x177   :  { %v1465_v6 = vsel %vm1382_vm10, %v1464_v17, %v1463_v55  ;;  %v510_v50 = vsub.s32 0, %v2870_v39  ;;  %v1306_v22 = vshrl.u32 %v2239_v9, %v1291_v27  ;;  %v1298_v4 = vor.u32 %v1297_v15, %v1296_v41 }
 0x178   :  { %v1468_v25 = vsel %vm2832_vm11, %v2643_v19, %v1465_v6  ;;  %v1301_v40 = vor.u32 %v1300_v57, %v1299_v59  ;;  %v1304_v31 = vor.u32 %v1303_v37, %v1302_v1  ;;  %v759_v29 = vand.u32 2139095040, %v2860_v61 }
 0x179   :  { %2166 = vcosq.f32 %v1468_v25  ;;  %v1958_v44 = vmin.u32 %v510_v50, %v2870_v39  ;;  %v1307_v7 = vor.u32 %v1306_v22, %v1305_v23  ;;  %v530_v42 = vsub.s32 4, %v506_v5 }
 0x17a   :  { %2168 = vsinq.f32 %v1468_v25  ;;  %v1292_v33 = vshrl.u32 %v2234_v56, %v1291_v27  ;;  %vm1308_vm3 = vcmp.lt.s32.totalorder %v1289_v43, 1  ;;  %vm1309_vm4 = vcmp.lt.s32.totalorder %v1289_v43, 2 }
 0x17b   :  { %v512_v26 = vclz %v1958_v44  ;;  %vm1310_vm5 = vcmp.lt.s32.totalorder %v1289_v43, 3  ;;  %vm1311_vm6 = vcmp.lt.s32.totalorder %v1289_v43, 4  ;;  %v1316_v34 = vsel %vm1308_vm3, %v1295_v21, %v1298_v4 }
 0x17c   :  { %v1313_v18 = vsel %vm1311_vm6, %v1301_v40, 2102212464  ;;  %v1317_v16 = vsel %vm1311_vm6, %v1304_v31, 920167782  ;;  %v1320_v36 = vsel %vm1308_vm3, %v1298_v4, %v1301_v40  ;;  %v1312_v38 = vsel %vm1308_vm3, %v1292_v33, %v1295_v21  ;;  %v2061_v33 = vpop.f32.mrf.mxu1 }
 0x17d   :  { %v1959_v32 = vadd.s32 4294967294, %v512_v26  ;;  %v1318_v14 = vsel %vm1310_vm5, %v1301_v40, %v1317_v16  ;;  %v1321_v45 = vsel %vm1311_vm6, %v1307_v7, 1326507024  ;;  %v1314_v20 = vsel %vm1310_vm5, %v1298_v4, %v1313_v18 }
 0x17e   :  { %v1319_v54 = vsel %vm1309_vm4, %v1316_v34, %v1318_v14  ;;  %v1322_v35 = vsel %vm1310_vm5, %v1304_v31, %v1321_v45  ;;  %v760_v47 = vshrl.u32 %v759_v29, 23  ;;  %v531_v52 = vsel %vm446_vm2, %v530_v42, %v506_v5 }
 0x17f   :  { %vm1960_vm7 = vcmp.lt.s32.totalorder %v1959_v32, 0  ;;  %v1323_v27 = vsel %vm1309_vm4, %v1320_v36, %v1322_v35  ;;  %v2891_v28 = vmul.u32.u64.low %v2863_v12, %v1319_v54  ;;  %v2892_v24 = vmul.u32.u64.high %v2863_v12, %v1319_v54, %v2891_v28 }
 0x180   :  { %v515_v11 = vsel %vm1960_vm7, 0, %v1959_v32  ;;  %v2898_v63 = vmul.u32.u64.low %v2863_v12, %v1323_v27  ;;  %v2899_v8 = vmul.u32.u64.high %v2863_v12, %v1323_v27, %v2898_v63  ;;  %v1315_v3 = vsel %vm1309_vm4, %v1312_v38, %v1314_v20 }
 0x181   :  { %v516_v55 = vsub.s32 32, %v515_v11  ;;  %v520_v10 = vsub.s32 4294967266, %v515_v11  ;;  %v1969_v48 = vadd.s32 4294967169, %v760_v47  ;;  %vm2904_vm8 = vcmp.le.f32.partialorder %v444_v13, 0.7853982 }
 0x182   :  { %v517_v57 = vshll.u32 %v2870_v39, %v515_v11  ;;  %v756_v17 = vand.u32 2147483647, %v2860_v61  ;;  %v1334_v21 = vadd.s32 1, %v2892_v24  ;;  %v1474_v43 = vand.u32 3, %v2852_v49 }
 0x183   :  { %v518_v5 = vshrl.u32 %v2856_v51, %v516_v55  ;;  %v521_v41 = vadd.s32 127, %v520_v10  ;;  %v766_v59 = vadd.s32 1, %v1969_v48  ;;  %v533_v1 = vsel %vm2904_vm8, 0, %v531_v52 }
 0x184   :  { %v1331_v13 = vmul.u32 %v2863_v12, %v1315_v3  ;;  %vm1333_vm9 = vc.u32 %v2899_v8, %v2891_v28  ;;  %vm1472_vm10 = vweird.f32 %v2643_v19  ;;  %v537_v4 = vadd.s32 3, %v533_v1 }
 0x185   :  { %v519_v37 = vor.u32 %v518_v5, %v517_v57  ;;  %v522_v39 = vshll.u32 %v521_v41, 23  ;;  %v1335_v6 = vsel %vm1333_vm9, %v1334_v21, %v2892_v24  ;;  %vm767_vm11 = vcmp.gt.s32.totalorder %v766_v59, 0 }
 0x186   :  { %v2167_v51 = vpop.eup %2166  ;;  %v1336_v50 = vadd.s32 %v1335_v6, %v1331_v13  ;;  %v768_v23 = vsel %vm767_vm11, %v766_v59, 0  ;;  %v763_v12 = vand.u32 8388607, %v756_v17  ;;  %vm1479_vm12 = vcmp.eq.s32.totalorder %v1474_v43, 2 }
 0x187   :  { %v2169_v22 = vpop.eup %2168  ;;  %v1480_v49 = vxor.u32 2147483648, %v2167_v51  ;;  %v523_v25 = vor.u32 4788187, %v522_v39  ;;  %v770_v44 = vand.u32 31, %v768_v23  ;;  %vm1476_vm13 = vcmp.eq.s32.totalorder %v1474_v43, 0 }
 0x188   :  { %v1477_v40 = vxor.u32 2147483648, %v2169_v22  ;;  %v1337_v31 = vadd.s32 536870912, %v1336_v50  ;;  %v526_v42 = vcvt.s32.f32 %v519_v37  ;;  %vm1475_vm14 = vcmp.lt.s32.totalorder %v1474_v43, 2 }
 0x189   :  { %v1481_v7 = vsel %vm1479_vm12, %v1480_v49, %v2169_v22  ;;  %v524_v29 = vand.u32 2147483647, %v523_v25  ;;  %v771_v34 = vsub.s32 32, %v770_v44  ;;  %v2924_v32 = vand.u32 3, %v537_v4 }
 0x18a   :  { %v1478_v26 = vsel %vm1476_vm13, %v2167_v51, %v1477_v40  ;;  %v2922_v18 = vshrl.u32 %v1337_v31, 30  ;;  %v764_v38 = vor.u32 8388608, %v763_v12  ;;  %v773_v20 = vshll.u32 %v2234_v56, %v770_v44 }
 0x18b   :  { %v1482_v16 = vsel %vm1475_vm14, %v1478_v26, %v1481_v7  ;;  %v527_v36 = vmul.f32 %v526_v42, %v524_v29  ;;  %v2931_v54 = vadd.f32 %v2788_v30, %v2061_v33  ;;  %v774_v47 = vshrl.u32 %v2235_v60, %v771_v34 }
 0x18c   :  { %v1483_v14 = vsel %vm1472_vm10, nan, %v1482_v16  ;;  %v1339_v45 = vshll.u32 %v2922_v18, 30  ;;  %v777_v27 = vshrl.u32 %v2236_v62, %v771_v34  ;;  %v780_v24 = vshrl.u32 %v2237_v0, %v771_v34 }
 0x18d   :  { %1911 = vst [vmem:[#allocation2 + $0x58] sm:$0xff] %v1483_v14  ;;  %v528_v35 = vxor.u32 2147483648, %v527_v36  ;;  %v776_v19 = vshll.u32 %v2235_v60, %v770_v44  ;;  %v779_v52 = vshll.u32 %v2236_v62, %v770_v44  ;;  %v783_v63 = vshrl.u32 %v2238_v2, %v771_v34 }
 0x18e   :  { %v2936_v11 = vsub.s32 %v1336_v50, %v1339_v45  ;;  %v769_v10 = vshrl.u32 %v768_v23, 5  ;;  %v775_v3 = vor.u32 %v774_v47, %v773_v20  ;;  %v782_v48 = vshll.u32 %v2237_v0, %v770_v44 }
 0x18f   :  { %v529_v55 = vsel %vm446_vm2, %v528_v35, %v527_v36  ;;  %v778_v41 = vor.u32 %v777_v27, %v776_v19  ;;  %v781_v21 = vor.u32 %v780_v24, %v779_v52  ;;  %v785_v43 = vshll.u32 %v2238_v2, %v770_v44 }
 0x190   :  { %v532_v57 = vsel %vm2904_vm8, %v2719_v46, %v529_v55  ;;  %v1342_v5 = vsub.s32 0, %v2936_v11  ;;  %v784_v59 = vor.u32 %v783_v63, %v782_v48  ;;  %v786_v1 = vshrl.u32 %v2239_v9, %v771_v34 }
 0x191   :  { %2170 = vcosq.f32 %v532_v57  ;;  %v804_v37 = vshll.u32 %v764_v38, 8  ;;  %v1591_v39 = vand.u32 2139095040, %v2931_v54  ;;  %v772_v6 = vshrl.u32 %v2234_v56, %v771_v34 }
 0x192   :  { %2172 = vsinq.f32 %v532_v57  ;;  %v1990_v13 = vmin.u32 %v1342_v5, %v2936_v11  ;;  %v787_v15 = vor.u32 %v786_v1, %v785_v43  ;;  %vm788_vm15 = vcmp.lt.s32.totalorder %v769_v10, 1 }
 0x193   :  { %vm789_vm0 = vcmp.lt.s32.totalorder %v769_v10, 2  ;;  %vm790_vm1 = vcmp.lt.s32.totalorder %v769_v10, 3  ;;  %vm791_vm2 = vcmp.lt.s32.totalorder %v769_v10, 4  ;;  %v796_v50 = vsel %vm788_vm15, %v775_v3, %v778_v41 }
 0x194   :  { %v1344_v51 = vclz %v1990_v13  ;;  %v793_v23 = vsel %vm791_vm2, %v781_v21, 2102212464  ;;  %v797_v22 = vsel %vm791_vm2, %v784_v59, 920167782  ;;  %v800_v49 = vsel %vm788_vm15, %v778_v41, %v781_v21 }
 0x195   :  { %v801_v25 = vsel %vm791_vm2, %v787_v15, 1326507024  ;;  %v1362_v12 = vsub.s32 4, %v2922_v18  ;;  %v798_v40 = vsel %vm790_vm1, %v781_v21, %v797_v22  ;;  %v792_v44 = vsel %vm788_vm15, %v772_v6, %v775_v3 }
 0x196   :  { %v1991_v4 = vadd.s32 4294967294, %v1344_v51  ;;  %v802_v31 = vsel %vm790_vm1, %v784_v59, %v801_v25  ;;  %v799_v7 = vsel %vm789_vm0, %v796_v50, %v798_v40  ;;  %v1592_v42 = vshrl.u32 %v1591_v39, 23 }
 0x197   :  { %v803_v29 = vsel %vm789_vm0, %v800_v49, %v802_v31  ;;  %v794_v33 = vsel %vm790_vm1, %v778_v41, %v793_v23  ;;  %v2962_v36 = vmul.u32.u64.low %v804_v37, %v799_v7  ;;  %v2963_v38 = vmul.u32.u64.high %v804_v37, %v799_v7, %v2962_v36 }
 0x198   :  { %vm1992_vm3 = vcmp.lt.s32.totalorder %v1991_v4, 0  ;;  %v2959_v26 = vmul.u32.u64.low %v804_v37, %v803_v29  ;;  %v2960_v34 = vmul.u32.u64.high %v804_v37, %v803_v29, %v2959_v26  ;;  %v2001_v14 = vadd.s32 4294967169, %v1592_v42 }
 0x199   :  { %v1347_v16 = vsel %vm1992_vm3, 0, %v1991_v4  ;;  %vm2968_vm4 = vcmp.le.f32.partialorder %v1276_v53, 0.7853982  ;;  %v1332_v20 = vadd.s32 %v2891_v28, %v2899_v8  ;;  %vm536_vm5 = vweird.f32 %v2719_v46 }
 0x19a   :  { %v1348_v35 = vsub.s32 32, %v1347_v16  ;;  %v1352_v47 = vsub.s32 4294967266, %v1347_v16  ;;  %vm539_vm6 = vcmp.lt.s32.totalorder %v2924_v32, 2  ;;  %vm1278_vm7 = vcmp.lt.s32.totalorder %v2791_v58, 0 }
 0x19b   :  { %v795_v27 = vsel %vm789_vm0, %v792_v44, %v794_v33  ;;  %v1598_v24 = vadd.s32 1, %v2001_v14  ;;  %v1349_v19 = vshll.u32 %v2936_v11, %v1347_v16  ;;  %vm813_vm8 = vc.u32 %v2960_v34, %v2962_v36  ;;  %v177_v11 = vpop.f32.mrf.mxu0 }
 0x19c   :  { %v1350_v53 = vshrl.u32 %v1332_v20, %v1348_v35  ;;  %v1353_v52 = vadd.s32 127, %v1352_v47  ;;  %vm540_vm9 = vcmp.eq.s32.totalorder %v2924_v32, 0  ;;  %v1363_v28 = vsel %vm1278_vm7, %v1362_v12, %v2922_v18 }
 0x19d   :  { %v814_v8 = vadd.s32 1, %v2963_v38  ;;  %vm1599_vm11 = vcmp.gt.s32.totalorder %v1598_v24, 0  ;;  %v811_v3 = vmul.u32 %v804_v37, %v795_v27  ;;  %v1588_v21 = vand.u32 2147483647, %v2931_v54 }
 0x19e   :  { %v2171_v63 = vpop.eup %2170  ;;  %v1351_v55 = vor.u32 %v1350_v53, %v1349_v19  ;;  %v1354_v10 = vshll.u32 %v1353_v52, 23  ;;  %v1600_v48 = vsel %vm1599_vm11, %v1598_v24, 0  ;;  %vm543_vm10 = vcmp.eq.s32.totalorder %v2924_v32, 2 }
 0x19f   :  { %v2173_v57 = vpop.eup %2172  ;;  %v544_v5 = vxor.u32 2147483648, %v2171_v63  ;;  %v815_v41 = vsel %vm813_vm8, %v814_v8, %v2963_v38  ;;  %v1602_v59 = vand.u32 31, %v1600_v48  ;;  %v1365_v39 = vsel %vm2968_vm4, 0, %v1363_v28 }
 0x1a0   :  { %v541_v43 = vxor.u32 2147483648, %v2173_v57  ;;  %v1355_v18 = vor.u32 4788187, %v1354_v10  ;;  %v816_v1 = vadd.s32 %v815_v41, %v811_v3  ;;  %v2992_v37 = vadd.f32 %v2788_v30, %v177_v11 }
 0x1a1   :  { %v545_v13 = vsel %vm543_vm10, %v544_v5, %v2173_v57  ;;  %v1603_v6 = vsub.s32 32, %v1602_v59  ;;  %v1358_v50 = vcvt.s32.f32 %v1351_v55  ;;  %v1595_v49 = vand.u32 8388607, %v1588_v21 }
 0x1a2   :  { %v542_v15 = vsel %vm540_vm9, %v2171_v63, %v541_v43  ;;  %v1356_v51 = vand.u32 2147483647, %v1355_v18  ;;  %v817_v23 = vadd.s32 536870912, %v816_v1  ;;  %v1601_v7 = vshrl.u32 %v1600_v48, 5 }
 0x1a3   :  { %v546_v22 = vsel %vm539_vm6, %v542_v15, %v545_v13  ;;  %v1606_v25 = vshrl.u32 %v2235_v60, %v1603_v6  ;;  %v1609_v4 = vshrl.u32 %v2236_v62, %v1603_v6  ;;  %v1612_v44 = vshrl.u32 %v2237_v0, %v1603_v6 }
 0x1a4   :  { %v547_v12 = vsel %vm536_vm5, nan, %v546_v22  ;;  %v1359_v40 = vmul.f32 %v1358_v50, %v1356_v51  ;;  %v818_v31 = vshrl.u32 %v817_v23, 30  ;;  %v1605_v29 = vshll.u32 %v2234_v56, %v1602_v59 }
 0x1a5   :  { %1902 = vst [vmem:[#allocation2 + $0x10] sm:$0xff] %v547_v12  ;;  %v1611_v32 = vshll.u32 %v2236_v62, %v1602_v59  ;;  %v1615_v42 = vshrl.u32 %v2238_v2, %v1603_v6  ;;  %v1608_v16 = vshll.u32 %v2235_v60, %v1602_v59  ;;  %v1614_v38 = vshll.u32 %v2237_v0, %v1602_v59 }
 0x1a6   :  { %v1360_v33 = vxor.u32 2147483648, %v1359_v40  ;;  %v819_v26 = vshll.u32 %v818_v31, 30  ;;  %v1607_v46 = vor.u32 %v1606_v25, %v1605_v29  ;;  %v1617_v20 = vshll.u32 %v2238_v2, %v1602_v59 }
 0x1a7   :  { %v1613_v14 = vor.u32 %v1612_v44, %v1611_v32  ;;  %v1618_v35 = vshrl.u32 %v2239_v9, %v1603_v6  ;;  %v1610_v24 = vor.u32 %v1609_v4, %v1608_v16  ;;  %v1616_v19 = vor.u32 %v1615_v42, %v1614_v38 }
 0x1a8   :  { %v1361_v47 = vsel %vm1278_vm7, %v1360_v33, %v1359_v40  ;;  %v3014_v27 = vsub.s32 %v816_v1, %v819_v26  ;;  %v1369_v52 = vadd.s32 3, %v1365_v39  ;;  %v1596_v28 = vor.u32 8388608, %v1595_v49 }
 0x1a9   :  { %v1364_v53 = vsel %vm2968_vm4, %v2791_v58, %v1361_v47  ;;  %v1619_v8 = vor.u32 %v1618_v35, %v1617_v20  ;;  %vm1623_vm12 = vcmp.lt.s32.totalorder %v1601_v7, 4  ;;  %v655_v55 = vand.u32 2139095040, %v2992_v37 }
 0x1aa   :  { %2174 = vcosq.f32 %v1364_v53  ;;  %v822_v63 = vsub.s32 0, %v3014_v27  ;;  %v1604_v10 = vshrl.u32 %v2234_v56, %v1603_v6  ;;  %vm1620_vm13 = vcmp.lt.s32.totalorder %v1601_v7, 1 }
 0x1ab   :  { %2176 = vsinq.f32 %v1364_v53  ;;  %v1625_v3 = vsel %vm1623_vm12, %v1613_v14, 2102212464  ;;  %vm1622_vm14 = vcmp.lt.s32.totalorder %v1601_v7, 3  ;;  %v1628_v11 = vsel %vm1620_vm13, %v1607_v46, %v1610_v24 }
 0x1ac   :  { %v1970_v48 = vmin.u32 %v822_v63, %v3014_v27  ;;  %v1629_v45 = vsel %vm1623_vm12, %v1616_v19, 920167782  ;;  %v842_v57 = vsub.s32 4, %v818_v31  ;;  %v1632_v41 = vsel %vm1620_vm13, %v1610_v24, %v1613_v14 }
 0x1ad   :  { %v1630_v5 = vsel %vm1622_vm14, %v1613_v14, %v1629_v45  ;;  %v1633_v59 = vsel %vm1623_vm12, %v1619_v8, 1326507024  ;;  %vm1621_vm15 = vcmp.lt.s32.totalorder %v1601_v7, 2  ;;  %v1624_v18 = vsel %vm1620_vm13, %v1604_v10, %v1607_v46 }
 0x1ae   :  { %v824_v43 = vclz %v1970_v48  ;;  %v1626_v1 = vsel %vm1622_vm14, %v1610_v24, %v1625_v3  ;;  %v1631_v13 = vsel %vm1621_vm15, %v1628_v11, %v1630_v5  ;;  %v1634_v39 = vsel %vm1622_vm14, %v1616_v19, %v1633_v59  ;;  %v217_v59 = vpop.f32.mrf.mxu1 }
 0x1af   :  { %v1636_v15 = vshll.u32 %v1596_v28, 8  ;;  %v656_v51 = vshrl.u32 %v655_v55, 23  ;;  %vm758_vm0 = vcmp.lt.s32.totalorder %v2860_v61, 0  ;;  %v1635_v50 = vsel %vm1621_vm15, %v1632_v41, %v1634_v39 }
 0x1b0   :  { %v1971_v6 = vadd.s32 4294967294, %v824_v43  ;;  %v843_v4 = vsel %vm758_vm0, %v842_v57, %v818_v31  ;;  %v1627_v12 = vsel %vm1621_vm15, %v1624_v18, %v1626_v1  ;;  %v1370_v44 = vand.u32 3, %v1369_v52 }
 0x1b1   :  { %v3024_v23 = vmul.u32.u64.low %v1636_v15, %v1635_v50  ;;  %v3025_v22 = vmul.u32.u64.high %v1636_v15, %v1635_v50, %v3024_v23  ;;  %v3027_v49 = vmul.u32.u64.low %v1636_v15, %v1631_v13  ;;  %v3028_v25 = vmul.u32.u64.high %v1636_v15, %v1631_v13, %v3027_v49 }
 0x1b2   :  { %vm1972_vm1 = vcmp.lt.s32.totalorder %v1971_v6, 0  ;;  %v1965_v40 = vadd.s32 4294967169, %v656_v51  ;;  %vm3035_vm2 = vcmp.le.f32.partialorder %v756_v17, 0.7853982  ;;  %v652_v32 = vand.u32 2147483647, %v2992_v37 }
 0x1b3   :  { %v827_v29 = vsel %vm1972_vm1, 0, %v1971_v6  ;;  %v812_v42 = vadd.s32 %v2962_v36, %v2960_v34  ;;  %v845_v31 = vsel %vm3035_vm2, 0, %v843_v4  ;;  %v1643_v38 = vmul.u32 %v1636_v15, %v1627_v12 }
 0x1b4   :  { %v828_v33 = vsub.s32 32, %v827_v29  ;;  %v832_v26 = vsub.s32 4294967266, %v827_v29  ;;  %v662_v16 = vadd.s32 1, %v1965_v40  ;;  %vm1645_vm3 = vc.u32 %v3025_v22, %v3027_v49 }
 0x1b5   :  { %v1646_v17 = vadd.s32 1, %v3028_v25  ;;  %v829_v46 = vshll.u32 %v3014_v27, %v827_v29  ;;  %vm1375_vm5 = vcmp.eq.s32.totalorder %v1370_v44, 2  ;;  %v849_v8 = vadd.s32 3, %v845_v31 }
 0x1b6   :  { %v830_v14 = vshrl.u32 %v812_v42, %v828_v33  ;;  %v833_v20 = vadd.s32 127, %v832_v26  ;;  %vm663_vm4 = vcmp.gt.s32.totalorder %v662_v16, 0  ;;  %v659_v63 = vand.u32 8388607, %v652_v32 }
 0x1b7   :  { %v2175_v35 = vpop.eup %2174  ;;  %v1647_v34 = vsel %vm1645_vm3, %v1646_v17, %v3028_v25  ;;  %v664_v36 = vsel %vm663_vm4, %v662_v16, 0  ;;  %vm1372_vm6 = vcmp.eq.s32.totalorder %v1370_v44, 0  ;;  %vm1368_vm7 = vweird.f32 %v2791_v58 }
 0x1b8   :  { %v2177_v47 = vpop.eup %2176  ;;  %v1376_v24 = vxor.u32 2147483648, %v2175_v35  ;;  %v831_v19 = vor.u32 %v830_v14, %v829_v46  ;;  %v834_v53 = vshll.u32 %v833_v20, 23  ;;  %v1648_v52 = vadd.s32 %v1647_v34, %v1643_v38 }
 0x1b9   :  { %v1373_v28 = vxor.u32 2147483648, %v2177_v47  ;;  %v666_v55 = vand.u32 31, %v664_v36  ;;  %vm1371_vm8 = vcmp.lt.s32.totalorder %v1370_v44, 2  ;;  %v3054_v18 = vand.u32 3, %v849_v8 }
 0x1ba   :  { %v1377_v27 = vsel %vm1375_vm5, %v1376_v24, %v2177_v47  ;;  %v835_v10 = vor.u32 4788187, %v834_v53  ;;  %v1649_v3 = vadd.s32 536870912, %v1648_v52  ;;  %v838_v5 = vcvt.s32.f32 %v831_v19 }
 0x1bb   :  { %v1374_v48 = vsel %vm1372_vm6, %v2175_v35, %v1373_v28  ;;  %v667_v11 = vsub.s32 32, %v666_v55  ;;  %v660_v1 = vor.u32 8388608, %v659_v63  ;;  %v665_v51 = vshrl.u32 %v664_v36, 5 }
 0x1bc   :  { %v1378_v45 = vsel %vm1371_vm8, %v1374_v48, %v1377_v27  ;;  %v836_v57 = vand.u32 2147483647, %v835_v10  ;;  %v3052_v41 = vshrl.u32 %v1649_v3, 30  ;;  %v3062_v23 = vadd.f32 %v2788_v30, %v217_v59 }
 0x1bd   :  { %v1379_v43 = vsel %vm1368_vm7, nan, %v1378_v45  ;;  %v670_v15 = vshrl.u32 %v2235_v60, %v667_v11  ;;  %v673_v58 = vshrl.u32 %v2236_v62, %v667_v11  ;;  %v676_v6 = vshrl.u32 %v2237_v0, %v667_v11 }
 0x1be   :  { %1910 = vst [vmem:[#allocation2 + $0x50] sm:$0xff] %v1379_v43  ;;  %v839_v13 = vmul.f32 %v838_v5, %v836_v57  ;;  %v1651_v39 = vshll.u32 %v3052_v41, 30  ;;  %v679_v50 = vshrl.u32 %v2238_v2, %v667_v11  ;;  %v669_v12 = vshll.u32 %v2234_v56, %v666_v55 }
 0x1bf   :  { %v672_v40 = vshll.u32 %v2235_v60, %v666_v55  ;;  %v675_v44 = vshll.u32 %v2236_v62, %v666_v55  ;;  %v678_v29 = vshll.u32 %v2237_v0, %v666_v55  ;;  %v681_v42 = vshll.u32 %v2238_v2, %v666_v55 }
 0x1c0   :  { %v840_v25 = vxor.u32 2147483648, %v839_v13  ;;  %v3064_v4 = vsub.s32 %v1648_v52, %v1651_v39  ;;  %v682_v33 = vshrl.u32 %v2239_v9, %v667_v11  ;;  %v671_v16 = vor.u32 %v670_v15, %v669_v12 }
 0x1c1   :  { %v674_v31 = vor.u32 %v673_v58, %v672_v40  ;;  %vm1590_vm9 = vcmp.lt.s32.totalorder %v2931_v54, 0  ;;  %v677_v17 = vor.u32 %v676_v6, %v675_v44  ;;  %v680_v46 = vor.u32 %v679_v50, %v678_v29 }
 0x1c2   :  { %v841_v26 = vsel %vm758_vm0, %v840_v25, %v839_v13  ;;  %v1654_v30 = vsub.s32 0, %v3064_v4  ;;  %v683_v14 = vor.u32 %v682_v33, %v681_v42  ;;  %v700_v35 = vshll.u32 %v660_v1, 8 }
 0x1c3   :  { %v844_v38 = vsel %vm3035_vm2, %v2860_v61, %v841_v26  ;;  %v1487_v34 = vand.u32 2139095040, %v3062_v23  ;;  %v1674_v36 = vsub.s32 4, %v3052_v41  ;;  %v668_v47 = vshrl.u32 %v2234_v56, %v667_v11 }
 0x1c4   :  { %2178 = vcosq.f32 %v844_v38  ;;  %v2002_v20 = vmin.u32 %v1654_v30, %v3064_v4  ;;  %vm684_vm11 = vcmp.lt.s32.totalorder %v665_v51, 1  ;;  %vm686_vm10 = vcmp.lt.s32.totalorder %v665_v51, 3 }
 0x1c5   :  { %2180 = vsinq.f32 %v844_v38  ;;  %vm687_vm12 = vcmp.lt.s32.totalorder %v665_v51, 4  ;;  %v692_v7 = vsel %vm684_vm11, %v671_v16, %v674_v31  ;;  %v696_v52 = vsel %vm684_vm11, %v674_v31, %v677_v17 }
 0x1c6   :  { %v1656_v24 = vclz %v2002_v20  ;;  %v689_v19 = vsel %vm687_vm12, %v677_v17, 2102212464  ;;  %v693_v53 = vsel %vm687_vm12, %v680_v46, 920167782  ;;  %v697_v28 = vsel %vm687_vm12, %v683_v14, 1326507024 }
 0x1c7   :  { %vm685_vm13 = vcmp.lt.s32.totalorder %v665_v51, 2  ;;  %v694_v63 = vsel %vm686_vm10, %v677_v17, %v693_v53  ;;  %v698_v55 = vsel %vm686_vm10, %v680_v46, %v697_v28  ;;  %v688_v27 = vsel %vm684_vm11, %v668_v47, %v671_v16  ;;  %v2052_v51 = vpop.f32.mrf.mxu0  ;;  %v3122_v46 = vld [vmem:[%s3462_s2] ss:$0 sm:$0xff]  ;;  %s2240_s2 = smov [#allocation2]  }
 0x1c8   :  { %v2003_v8 = vadd.s32 4294967294, %v1656_v24  ;;  %v695_v10 = vsel %vm685_vm13, %v692_v7, %v694_v63  ;;  %v699_v3 = vsel %vm685_vm13, %v696_v52, %v698_v55  ;;  %v1488_v48 = vshrl.u32 %v1487_v34, 23  ;;  %s1921_s28 = sshll.u32 %s2240_s2, 4  ;;  %s1922_s28 = int_to_ptr.vmem [resolvable:$true] %s1921_s28 }
 0x1c9   :  { %v690_v11 = vsel %vm686_vm10, %v674_v31, %v689_v19  ;;  %v3088_v45 = vmul.u32.u64.low %v700_v35, %v699_v3  ;;  %v3089_v57 = vmul.u32.u64.high %v700_v35, %v699_v3, %v3088_v45  ;;  %v1644_v13 = vadd.s32 %v3027_v49, %v3025_v22  ;;  %s2212_s29 = scalar_lea.vmem %s1922_s28, 2048  ;;  %p2217_p1 = scmp.lt.s32.totalorder %s1922_s28, %s1922_s28 }
 0x1ca   :  { %vm2004_vm14 = vcmp.lt.s32.totalorder %v2003_v8, 0  ;;  %v3091_v59 = vmul.u32.u64.low %v700_v35, %v695_v10  ;;  %v3092_v43 = vmul.u32.u64.high %v700_v35, %v695_v10, %v3091_v59  ;;  %v1997_v1 = vadd.s32 4294967169, %v1488_v48  ;;  %p2213_p0 = scmp.ne.s32.totalorder %s1922_s28, %s2212_s29  ;;  %p2218_p2 = scmp.lt.s32.totalorder %s2212_s29, %s2212_s29 }
 0x1cb   :  { %v1659_v5 = vsel %vm2004_vm14, 0, %v2003_v8  ;;  %v1675_v58 = vsel %vm1590_vm9, %v1674_v36, %v3052_v41  ;;  %vm851_vm15 = vcmp.lt.s32.totalorder %v3054_v18, 2  ;;  %vm3103_vm0 = vcmp.le.f32.partialorder %v1588_v21, 0.7853982 }
 0x1cc   :  { %v1660_v39 = vsub.s32 32, %v1659_v5  ;;  %v1664_v15 = vsub.s32 4294967266, %v1659_v5  ;;  %v691_v50 = vsel %vm685_vm13, %v688_v27, %v690_v11  ;;  %v1494_v25 = vadd.s32 1, %v1997_v1  ;;  %p2219_p3 = por %p2218_p2, %p2217_p1 }
 0x1cd   :  { %vm848_vm1 = vweird.f32 %v2860_v61  ;;  %v1661_v22 = vshll.u32 %v3064_v4, %v1659_v5  ;;  %vm709_vm2 = vc.u32 %v3089_v57, %v3091_v59  ;;  %v1677_v41 = vsel %vm3103_vm0, 0, %v1675_v58 }
 0x1ce   :  { %v1662_v49 = vshrl.u32 %v1644_v13, %v1660_v39  ;;  %v1665_v12 = vadd.s32 127, %v1664_v15  ;;  %v710_v21 = vadd.s32 1, %v3092_v43  ;;  %v1484_v40 = vand.u32 2147483647, %v3062_v23  ;;  %p2220_p4 = pnand %p2219_p3, %p2213_p0 }
 0x1cf   :  { %vm1495_vm3 = vcmp.gt.s32.totalorder %v1494_v25, 0  ;;  %v707_v42 = vmul.u32 %v700_v35, %v691_v50  ;;  %vm852_vm4 = vcmp.eq.s32.totalorder %v3054_v18, 0  ;;  %vm855_vm5 = vcmp.eq.s32.totalorder %v3054_v18, 2 }
 0x1d0   :  { %v1663_v44 = vor.u32 %v1662_v49, %v1661_v22  ;;  %v1666_v29 = vshll.u32 %v1665_v12, 23  ;;  %v1496_v33 = vsel %vm1495_vm3, %v1494_v25, 0  ;;  %v711_v4 = vsel %vm709_vm2, %v710_v21, %v3092_v43 }
 0x1d1   :  { %v2179_v26 = vpop.eup %2178  ;;  %v1498_v30 = vand.u32 31, %v1496_v33  ;;  %v712_v17 = vadd.s32 %v711_v4, %v707_v42  ;;  %v3125_v14 = vadd.f32 %v3122_v46, %v2052_v51  ;;  %v3127_v35 = vadd.s32 3, %v1677_v41 }
 0x1d2   :  { %v2181_v16 = vpop.eup %2180  ;;  %v856_v31 = vxor.u32 2147483648, %v2179_v26  ;;  %v1667_v38 = vor.u32 4788187, %v1666_v29  ;;  %v1491_v34 = vand.u32 8388607, %v1484_v40  ;;  %v1670_v7 = vcvt.s32.f32 %v1663_v44 }
 0x1d3   :  { %v853_v20 = vxor.u32 2147483648, %v2181_v16  ;;  %v1499_v36 = vsub.s32 32, %v1498_v30  ;;  %v713_v19 = vadd.s32 536870912, %v712_v17  ;;  %v1501_v52 = vshll.u32 %v2234_v56, %v1498_v30 }
 0x1d4   :  { %v857_v47 = vsel %vm855_vm5, %v856_v31, %v2181_v16  ;;  %v1668_v24 = vand.u32 2147483647, %v1667_v38  ;;  %v1492_v48 = vor.u32 8388608, %v1491_v34  ;;  %v1497_v11 = vshrl.u32 %v1496_v33, 5 }
 0x1d5   :  { %v854_v53 = vsel %vm852_vm4, %v2179_v26, %v853_v20  ;;  %v1502_v28 = vshrl.u32 %v2235_v60, %v1499_v36  ;;  %v1505_v8 = vshrl.u32 %v2236_v62, %v1499_v36  ;;  %v3138_v27 = vshrl.u32 %v713_v19, 30 }
 0x1d6   :  { %v858_v63 = vsel %vm851_vm15, %v854_v53, %v857_v47  ;;  %v1671_v55 = vmul.f32 %v1670_v7, %v1668_v24  ;;  %v1508_v10 = vshrl.u32 %v2237_v0, %v1499_v36  ;;  %v1504_v45 = vshll.u32 %v2235_v60, %v1498_v30  ;;  %v2064_v7 = vpop.f32.mrf.mxu1 }
 0x1d7   :  { %v859_v3 = vsel %vm848_vm1, nan, %v858_v63  ;;  %v715_v43 = vshll.u32 %v3138_v27, 30  ;;  %v1503_v1 = vor.u32 %v1502_v28, %v1501_v52  ;;  %v1507_v18 = vshll.u32 %v2236_v62, %v1498_v30 }
 0x1d8   :  { %1905 = vst [vmem:[#allocation2 + $0x28] sm:$0xff] %v859_v3  ;;  %v1672_v5 = vxor.u32 2147483648, %v1671_v55  ;;  %v1510_v13 = vshll.u32 %v2237_v0, %v1498_v30  ;;  %v1511_v39 = vshrl.u32 %v2238_v2, %v1499_v36  ;;  %v1513_v15 = vshll.u32 %v2238_v2, %v1498_v30 }
 0x1d9   :  { %v1514_v61 = vshrl.u32 %v2239_v9, %v1499_v36  ;;  %v3152_v50 = vsub.s32 %v712_v17, %v715_v43  ;;  %v1506_v25 = vor.u32 %v1505_v8, %v1504_v45  ;;  %v1509_v22 = vor.u32 %v1508_v10, %v1507_v18 }
 0x1da   :  { %v1673_v58 = vsel %vm1590_vm9, %v1672_v5, %v1671_v55  ;;  %v1512_v12 = vor.u32 %v1511_v39, %v1510_v13  ;;  %v964_v21 = vand.u32 2147483647, %v3125_v14  ;;  %v1500_v44 = vshrl.u32 %v2234_v56, %v1499_v36 }
 0x1db   :  { %v1676_v49 = vsel %vm3103_vm0, %v2931_v54, %v1673_v58  ;;  %v1515_v41 = vor.u32 %v1514_v61, %v1513_v15  ;;  %v718_v51 = vsub.s32 0, %v3152_v50  ;;  %v967_v29 = vand.u32 2139095040, %v3125_v14 }
 0x1dc   :  { %2182 = vcosq.f32 %v1676_v49  ;;  %vm654_vm6 = vcmp.lt.s32.totalorder %v2992_v37, 0  ;;  %vm1516_vm7 = vcmp.lt.s32.totalorder %v1497_v11, 1  ;;  %vm1518_vm8 = vcmp.lt.s32.totalorder %v1497_v11, 3 }
 0x1dd   :  { %2184 = vsinq.f32 %v1676_v49  ;;  %vm1519_vm9 = vcmp.lt.s32.totalorder %v1497_v11, 4  ;;  %v1966_v6 = vmin.u32 %v718_v51, %v3152_v50  ;;  %v1524_v33 = vsel %vm1516_vm7, %v1503_v1, %v1506_v25 }
 0x1de   :  { %v1521_v42 = vsel %vm1519_vm9, %v1509_v22, 2102212464  ;;  %v1525_v26 = vsel %vm1519_vm9, %v1512_v12, 920167782  ;;  %v1528_v30 = vsel %vm1516_vm7, %v1506_v25, %v1509_v22  ;;  %v1529_v16 = vsel %vm1519_vm9, %v1515_v41, 1326507024 }
 0x1df   :  { %v1526_v4 = vsel %vm1518_vm8, %v1509_v22, %v1525_v26  ;;  %v1532_v31 = vshll.u32 %v1492_v48, 8  ;;  %v720_v38 = vclz %v1966_v6  ;;  %v738_v17 = vsub.s32 4, %v3138_v27 }
 0x1e0   :  { %vm1517_vm11 = vcmp.lt.s32.totalorder %v1497_v11, 2  ;;  %v1520_v20 = vsel %vm1516_vm7, %v1500_v44, %v1503_v1  ;;  %v1522_v34 = vsel %vm1518_vm8, %v1506_v25, %v1521_v42  ;;  %v1530_v47 = vsel %vm1518_vm8, %v1512_v12, %v1529_v16 }
 0x1e1   :  { %v1527_v36 = vsel %vm1517_vm11, %v1524_v33, %v1526_v4  ;;  %v968_v24 = vshrl.u32 %v967_v29, 23  ;;  %v1967_v19 = vadd.s32 4294967294, %v720_v38  ;;  %v1531_v53 = vsel %vm1517_vm11, %v1528_v30, %v1530_v47 }
 0x1e2   :  { %v3167_v52 = vmul.u32.u64.low %v1532_v31, %v1527_v36  ;;  %v3168_v28 = vmul.u32.u64.high %v1532_v31, %v1527_v36, %v3167_v52  ;;  %vm3172_vm10 = vcmp.le.f32.partialorder %v652_v32, 0.7853982  ;;  %v1682_v3 = vand.u32 3, %v3127_v35 }
 0x1e3   :  { %v3176_v63 = vmul.u32.u64.low %v1532_v31, %v1531_v53  ;;  %v3177_v55 = vmul.u32.u64.high %v1532_v31, %v1531_v53, %v3176_v63  ;;  %v1977_v10 = vadd.s32 4294967169, %v968_v24  ;;  %vm1968_vm12 = vcmp.lt.s32.totalorder %v1967_v19, 0 }
 0x1e4   :  { %v1523_v48 = vsel %vm1517_vm11, %v1520_v20, %v1522_v34  ;;  %v3181_v11 = vadd.f32 %v3122_v46, %v2064_v7  ;;  %v708_v45 = vadd.s32 %v3091_v59, %v3089_v57  ;;  %v723_v5 = vsel %vm1968_vm12, 0, %v1967_v19 }
 0x1e5   :  { %v3187_v32 = vand.u32 8388607, %v964_v21  ;;  %v974_v43 = vadd.s32 1, %v1977_v10  ;;  %vm1680_vm13 = vweird.f32 %v2931_v54  ;;  %v724_v1 = vsub.s32 32, %v723_v5 }
 0x1e6   :  { %v728_v18 = vsub.s32 4294967266, %v723_v5  ;;  %v739_v35 = vsel %vm654_vm6, %v738_v17, %v3138_v27  ;;  %v1542_v13 = vadd.s32 1, %v3168_v28  ;;  %v725_v39 = vshll.u32 %v3152_v50, %v723_v5 }
 0x1e7   :  { %v1539_v15 = vmul.u32 %v1532_v31, %v1523_v48  ;;  %vm1541_vm14 = vc.u32 %v3177_v55, %v3167_v52  ;;  %vm975_vm15 = vcmp.gt.s32.totalorder %v974_v43, 0  ;;  %v726_v57 = vshrl.u32 %v708_v45, %v724_v1 }
 0x1e8   :  { %v729_v59 = vadd.s32 127, %v728_v18  ;;  %v1543_v61 = vsel %vm1541_vm14, %v1542_v13, %v3168_v28  ;;  %v976_v58 = vsel %vm975_vm15, %v974_v43, 0  ;;  %vm1683_vm0 = vcmp.lt.s32.totalorder %v1682_v3, 2 }
 0x1e9   :  { %v2183_v25 = vpop.eup %2182  ;;  %v741_v22 = vsel %vm3172_vm10, 0, %v739_v35  ;;  %v1544_v49 = vadd.s32 %v1543_v61, %v1539_v15  ;;  %v978_v27 = vand.u32 31, %v976_v58  ;;  %vm1684_vm1 = vcmp.eq.s32.totalorder %v1682_v3, 0 }
 0x1ea   :  { %v2185_v12 = vpop.eup %2184  ;;  %v1688_v41 = vxor.u32 2147483648, %v2183_v25  ;;  %v727_v50 = vor.u32 %v726_v57, %v725_v39  ;;  %v730_v51 = vshll.u32 %v729_v59, 23  ;;  %vm1687_vm2 = vcmp.eq.s32.totalorder %v1682_v3, 2 }
 0x1eb   :  { %v1685_v44 = vxor.u32 2147483648, %v2185_v12  ;;  %v1545_v29 = vadd.s32 536870912, %v1544_v49  ;;  %v979_v6 = vsub.s32 32, %v978_v27  ;;  %v3199_v26 = vadd.s32 3, %v741_v22 }
 0x1ec   :  { %v1689_v42 = vsel %vm1687_vm2, %v1688_v41, %v2185_v12  ;;  %v731_v33 = vor.u32 4788187, %v730_v51  ;;  %v972_v4 = vor.u32 8388608, %v3187_v32  ;;  %v1796_v31 = vand.u32 2147483647, %v3181_v11 }
 0x1ed   :  { %v1686_v30 = vsel %vm1684_vm1, %v2183_v25, %v1685_v44  ;;  %v1546_v16 = vshrl.u32 %v1545_v29, 30  ;;  %v1799_v38 = vand.u32 2139095040, %v3181_v11  ;;  %v734_v34 = vcvt.s32.f32 %v727_v50 }
 0x1ee   :  { %v1690_v17 = vsel %vm1683_vm0, %v1686_v30, %v1689_v42  ;;  %v732_v20 = vand.u32 2147483647, %v731_v33  ;;  %v982_v36 = vshrl.u32 %v2235_v60, %v979_v6  ;;  %v3209_v24 = vadd.s32 %v3167_v52, %v3177_v55 }
 0x1ef   :  { %v1691_v47 = vsel %vm1680_vm13, nan, %v1690_v17  ;;  %v1547_v7 = vshll.u32 %v1546_v16, 30  ;;  %v985_v19 = vshrl.u32 %v2236_v62, %v979_v6  ;;  %v977_v28 = vshrl.u32 %v976_v58, 5 }
 0x1f0   :  { %1913 = vst [vmem:[#allocation2 + $0x68] sm:$0xff] %v1691_v47  ;;  %v735_v53 = vmul.f32 %v734_v34, %v732_v20  ;;  %v981_v63 = vshll.u32 %v2234_v56, %v978_v27  ;;  %v988_v10 = vshrl.u32 %v2237_v0, %v979_v6  ;;  %v984_v48 = vshll.u32 %v2235_v60, %v978_v27 }
 0x1f1   :  { %v3214_v3 = vsub.s32 %v1544_v49, %v1547_v7  ;;  %v987_v54 = vshll.u32 %v2236_v62, %v978_v27  ;;  %v991_v45 = vshrl.u32 %v2238_v2, %v979_v6  ;;  %v990_v5 = vshll.u32 %v2237_v0, %v978_v27 }
 0x1f2   :  { %v736_v52 = vxor.u32 2147483648, %v735_v53  ;;  %v983_v55 = vor.u32 %v982_v36, %v981_v63  ;;  %v994_v32 = vshrl.u32 %v2239_v9, %v979_v6  ;;  %vm1486_vm3 = vcmp.lt.s32.totalorder %v3062_v23, 0 }
 0x1f3   :  { %v1550_v43 = vsub.s32 0, %v3214_v3  ;;  %v986_v1 = vor.u32 %v985_v19, %v984_v48  ;;  %v989_v18 = vor.u32 %v988_v10, %v987_v54  ;;  %v993_v35 = vshll.u32 %v2238_v2, %v978_v27 }
 0x1f4   :  { %v737_v13 = vsel %vm654_vm6, %v736_v52, %v735_v53  ;;  %v992_v39 = vor.u32 %v991_v45, %v990_v5  ;;  %v1012_v15 = vshll.u32 %v972_v4, 8  ;;  %v1800_v57 = vshrl.u32 %v1799_v38, 23 }
 0x1f5   :  { %v740_v59 = vsel %vm3172_vm10, %v2992_v37, %v737_v13  ;;  %v1998_v61 = vmin.u32 %v1550_v43, %v3214_v3  ;;  %v980_v58 = vshrl.u32 %v2234_v56, %v979_v6  ;;  %v995_v25 = vor.u32 %v994_v32, %v993_v35 }
 0x1f6   :  { %2186 = vcosq.f32 %v740_v59  ;;  %v1570_v22 = vsub.s32 4, %v1546_v16  ;;  %vm996_vm4 = vcmp.lt.s32.totalorder %v977_v28, 1  ;;  %vm999_vm5 = vcmp.lt.s32.totalorder %v977_v28, 4 }
 0x1f7   :  { %2188 = vsinq.f32 %v740_v59  ;;  %v1552_v49 = vclz %v1998_v61  ;;  %v1001_v27 = vsel %vm999_vm5, %v989_v18, 2102212464  ;;  %v1004_v12 = vsel %vm996_vm4, %v983_v55, %v986_v1 }
 0x1f8   :  { %vm997_vm6 = vcmp.lt.s32.totalorder %v977_v28, 2  ;;  %vm998_vm7 = vcmp.lt.s32.totalorder %v977_v28, 3  ;;  %v1005_v41 = vsel %vm999_vm5, %v992_v39, 920167782  ;;  %v1008_v50 = vsel %vm996_vm4, %v986_v1, %v989_v18 }
 0x1f9   :  { %v1999_v51 = vadd.s32 4294967294, %v1552_v49  ;;  %v1000_v8 = vsel %vm996_vm4, %v980_v58, %v983_v55  ;;  %v1006_v44 = vsel %vm998_vm7, %v989_v18, %v1005_v41  ;;  %v1009_v29 = vsel %vm999_vm5, %v995_v25, 1326507024 }
 0x1fa   :  { %v1002_v42 = vsel %vm998_vm7, %v986_v1, %v1001_v27  ;;  %v1007_v6 = vsel %vm997_vm6, %v1004_v12, %v1006_v44  ;;  %v1010_v33 = vsel %vm998_vm7, %v992_v39, %v1009_v29  ;;  %v2009_v4 = vadd.s32 4294967169, %v1800_v57 }
 0x1fb   :  { %vm2000_vm8 = vcmp.lt.s32.totalorder %v1999_v51, 0  ;;  %v1011_v30 = vsel %vm997_vm6, %v1008_v50, %v1010_v33  ;;  %v3233_v38 = vmul.u32.u64.low %v1012_v15, %v1007_v6  ;;  %v3234_v17 = vmul.u32.u64.high %v1012_v15, %v1007_v6, %v3233_v38 }
 0x1fc   :  { %v1555_v20 = vsel %vm2000_vm8, 0, %v1999_v51  ;;  %v1571_v34 = vsel %vm1486_vm3, %v1570_v22, %v1546_v16  ;;  %v3239_v36 = vmul.u32.u64.low %v1012_v15, %v1011_v30  ;;  %v3240_v47 = vmul.u32.u64.high %v1012_v15, %v1011_v30, %v3239_v36 }
 0x1fd   :  { %v1556_v7 = vsub.s32 32, %v1555_v20  ;;  %v1560_v19 = vsub.s32 4294967266, %v1555_v20  ;;  %v1003_v53 = vsel %vm997_vm6, %v1000_v8, %v1002_v42  ;;  %v1806_v63 = vadd.s32 1, %v2009_v4 }
 0x1fe   :  { %v746_v10 = vand.u32 3, %v3199_v26  ;;  %vm3246_vm9 = vcmp.le.f32.partialorder %v1484_v40, 0.7853982  ;;  %v1557_v54 = vshll.u32 %v3214_v3, %v1555_v20  ;;  %v1022_v52 = vadd.s32 1, %v3234_v17 }
 0x1ff   :  { %v1558_v16 = vshrl.u32 %v3209_v24, %v1556_v7  ;;  %v1561_v45 = vadd.s32 127, %v1560_v19  ;;  %vm1807_vm11 = vcmp.gt.s32.totalorder %v1806_v63, 0  ;;  %v1573_v28 = vsel %vm3246_vm9, 0, %v1571_v34  ;;  %v187_v19 = vpop.f32.mrf.mxu0 }
 0x200   :  { %v1019_v55 = vmul.u32 %v1012_v15, %v1003_v53  ;;  %vm1021_vm10 = vc.u32 %v3240_v47, %v3233_v38  ;;  %v1808_v26 = vsel %vm1807_vm11, %v1806_v63, 0  ;;  %v1803_v3 = vand.u32 8388607, %v1796_v31 }
 0x201   :  { %v1559_v40 = vor.u32 %v1558_v16, %v1557_v54  ;;  %v1562_v5 = vshll.u32 %v1561_v45, 23  ;;  %v1023_v32 = vsel %vm1021_vm10, %v1022_v52, %v3234_v17  ;;  %vm744_vm12 = vweird.f32 %v2992_v37 }
 0x202   :  { %v1024_v24 = vadd.s32 %v1023_v32, %v1019_v55  ;;  %v1810_v43 = vand.u32 31, %v1808_v26  ;;  %vm747_vm13 = vcmp.lt.s32.totalorder %v746_v10, 2  ;;  %vm748_vm14 = vcmp.eq.s32.totalorder %v746_v10, 0 }
 0x203   :  { %v2187_v1 = vpop.eup %2186  ;;  %vm751_vm15 = vcmp.eq.s32.totalorder %v746_v10, 2  ;;  %v1563_v18 = vor.u32 4788187, %v1562_v5  ;;  %v1577_v39 = vadd.s32 3, %v1573_v28  ;;  %v1566_v58 = vcvt.s32.f32 %v1559_v40 }
 0x204   :  { %v2189_v35 = vpop.eup %2188  ;;  %v752_v13 = vxor.u32 2147483648, %v2187_v1  ;;  %v1025_v15 = vadd.s32 536870912, %v1024_v24  ;;  %v1811_v57 = vsub.s32 32, %v1810_v43  ;;  %v1804_v25 = vor.u32 8388608, %v1803_v3 }
 0x205   :  { %v749_v59 = vxor.u32 2147483648, %v2189_v35  ;;  %v1564_v61 = vand.u32 2147483647, %v1563_v18  ;;  %v1813_v27 = vshll.u32 %v2234_v56, %v1810_v43  ;;  %v1809_v42 = vshrl.u32 %v1808_v26, 5 }
 0x206   :  { %v753_v22 = vsel %vm751_vm15, %v752_v13, %v2189_v35  ;;  %v3261_v49 = vshrl.u32 %v1025_v15, 30  ;;  %v1814_v12 = vshrl.u32 %v2235_v60, %v1811_v57  ;;  %v1817_v51 = vshrl.u32 %v2236_v62, %v1811_v57 }
 0x207   :  { %v750_v41 = vsel %vm748_vm14, %v2187_v1, %v749_v59  ;;  %v1567_v50 = vmul.f32 %v1566_v58, %v1564_v61  ;;  %v1820_v8 = vshrl.u32 %v2237_v0, %v1811_v57  ;;  %v1816_v6 = vshll.u32 %v2235_v60, %v1810_v43  ;;  %v227_v58 = vpop.f32.mrf.mxu1 }
 0x208   :  { %v754_v44 = vsel %vm747_vm13, %v750_v41, %v753_v22  ;;  %v1027_v29 = vshll.u32 %v3261_v49, 30  ;;  %v1815_v30 = vor.u32 %v1814_v12, %v1813_v27  ;;  %v1819_v17 = vshll.u32 %v2236_v62, %v1810_v43 }
 0x209   :  { %v755_v33 = vsel %vm744_vm12, nan, %v754_v44  ;;  %v1568_v4 = vxor.u32 2147483648, %v1567_v50  ;;  %v1818_v34 = vor.u32 %v1817_v51, %v1816_v6  ;;  %v1822_v36 = vshll.u32 %v2237_v0, %v1810_v43 }
 0x20a   :  { %1904 = vst [vmem:[#allocation2 + $0x20] sm:$0xff] %v755_v33  ;;  %v3274_v20 = vsub.s32 %v1024_v24, %v1027_v29  ;;  %v1823_v7 = vshrl.u32 %v2238_v2, %v1811_v57  ;;  %v1821_v63 = vor.u32 %v1820_v8, %v1819_v17  ;;  %v1825_v37 = vshll.u32 %v2238_v2, %v1810_v43 }
 0x20b   :  { %v1569_v53 = vsel %vm1486_vm3, %v1568_v4, %v1567_v50  ;;  %v1826_v10 = vshrl.u32 %v2239_v9, %v1811_v57  ;;  %v3285_v16 = vand.u32 3, %v1577_v39  ;;  %vm1828_vm0 = vcmp.lt.s32.totalorder %v1809_v42, 1 }
 0x20c   :  { %v1572_v54 = vsel %vm3246_vm9, %v3062_v23, %v1569_v53  ;;  %v1030_v45 = vsub.s32 0, %v3274_v20  ;;  %v1824_v52 = vor.u32 %v1823_v7, %v1822_v36  ;;  %v3289_v55 = vadd.f32 %v3122_v46, %v187_v19 }
 0x20d   :  { %2190 = vcosq.f32 %v1572_v54  ;;  %v1827_v28 = vor.u32 %v1826_v10, %v1825_v37  ;;  %v1812_v40 = vshrl.u32 %v2234_v56, %v1811_v57  ;;  %vm1831_vm1 = vcmp.lt.s32.totalorder %v1809_v42, 4 }
 0x20e   :  { %2192 = vsinq.f32 %v1572_v54  ;;  %v1978_v26 = vmin.u32 %v1030_v45, %v3274_v20  ;;  %v1833_v5 = vsel %vm1831_vm1, %v1821_v63, 2102212464  ;;  %v1836_v48 = vsel %vm1828_vm0, %v1815_v30, %v1818_v34 }
 0x20f   :  { %v1837_v32 = vsel %vm1831_vm1, %v1824_v52, 920167782  ;;  %v1844_v3 = vshll.u32 %v1804_v25, 8  ;;  %vm1830_vm2 = vcmp.lt.s32.totalorder %v1809_v42, 3  ;;  %v1832_v43 = vsel %vm1828_vm0, %v1812_v40, %v1815_v30 }
 0x210   :  { %v1032_v24 = vclz %v1978_v26  ;;  %v1840_v1 = vsel %vm1828_vm0, %v1818_v34, %v1821_v63  ;;  %vm1829_vm3 = vcmp.lt.s32.totalorder %v1809_v42, 2  ;;  %v1834_v18 = vsel %vm1830_vm2, %v1818_v34, %v1833_v5 }
 0x211   :  { %v1838_v35 = vsel %vm1830_vm2, %v1821_v63, %v1837_v32  ;;  %v1841_v13 = vsel %vm1831_vm1, %v1827_v28, 1326507024  ;;  %v1050_v15 = vsub.s32 4, %v3261_v49  ;;  %v1835_v57 = vsel %vm1829_vm3, %v1832_v43, %v1834_v18 }
 0x212   :  { %v1979_v39 = vadd.s32 4294967294, %v1032_v24  ;;  %v1839_v59 = vsel %vm1829_vm3, %v1836_v48, %v1838_v35  ;;  %v1842_v61 = vsel %vm1830_vm2, %v1824_v52, %v1841_v13  ;;  %v863_v50 = vand.u32 2139095040, %v3289_v55 }
 0x213   :  { %v1843_v22 = vsel %vm1829_vm3, %v1840_v1, %v1842_v61  ;;  %v3294_v27 = vmul.u32.u64.low %v1844_v3, %v1839_v59  ;;  %v3295_v12 = vmul.u32.u64.high %v1844_v3, %v1839_v59, %v3294_v27  ;;  %vm966_vm5 = vcmp.lt.s32.totalorder %v3125_v14, 0 }
 0x214   :  { %vm1980_vm4 = vcmp.lt.s32.totalorder %v1979_v39, 0  ;;  %v3298_v25 = vmul.u32.u64.low %v1844_v3, %v1843_v22  ;;  %v3299_v41 = vmul.u32.u64.high %v1844_v3, %v1843_v22, %v3298_v25  ;;  %v1020_v51 = vadd.s32 %v3233_v38, %v3240_v47 }
 0x215   :  { %v1035_v8 = vsel %vm1980_vm4, 0, %v1979_v39  ;;  %v3306_v44 = vadd.f32 %v3122_v46, %v227_v58  ;;  %v1051_v6 = vsel %vm966_vm5, %v1050_v15, %v3261_v49  ;;  %v864_v33 = vshrl.u32 %v863_v50, 23 }
 0x216   :  { %v1036_v29 = vsub.s32 32, %v1035_v8  ;;  %v1040_v42 = vsub.s32 4294967266, %v1035_v8  ;;  %vm1579_vm6 = vcmp.lt.s32.totalorder %v3285_v16, 2  ;;  %vm3314_vm7 = vcmp.le.f32.partialorder %v964_v21, 0.7853982 }
 0x217   :  { %v1851_v38 = vmul.u32 %v1844_v3, %v1835_v57  ;;  %v1854_v47 = vadd.s32 1, %v3295_v12  ;;  %v1037_v46 = vshll.u32 %v3274_v20, %v1035_v8  ;;  %vm1853_vm8 = vc.u32 %v3299_v41, %v3294_v27 }
 0x218   :  { %v1038_v30 = vshrl.u32 %v1020_v51, %v1036_v29  ;;  %v1041_v17 = vadd.s32 127, %v1040_v42  ;;  %v1053_v49 = vsel %vm3314_vm7, 0, %v1051_v6  ;;  %v1973_v36 = vadd.s32 4294967169, %v864_v33 }
 0x219   :  { %v1855_v34 = vsel %vm1853_vm8, %v1854_v47, %v3295_v12  ;;  %v1695_v21 = vand.u32 2139095040, %v3306_v44  ;;  %vm1580_vm9 = vcmp.eq.s32.totalorder %v3285_v16, 0  ;;  %vm1583_vm11 = vcmp.eq.s32.totalorder %v3285_v16, 2 }
 0x21a   :  { %v2191_v7 = vpop.eup %2190  ;;  %v1039_v19 = vor.u32 %v1038_v30, %v1037_v46  ;;  %v1042_v53 = vshll.u32 %v1041_v17, 23  ;;  %v1856_v63 = vadd.s32 %v1855_v34, %v1851_v38  ;;  %v860_v10 = vand.u32 2147483647, %v3289_v55 }
 0x21b   :  { %v2193_v20 = vpop.eup %2192  ;;  %v1584_v37 = vxor.u32 2147483648, %v2191_v7  ;;  %v870_v54 = vadd.s32 1, %v1973_v36  ;;  %v1057_v28 = vadd.s32 3, %v1053_v49  ;;  %v1696_v48 = vshrl.u32 %v1695_v21, 23 }
 0x21c   :  { %v1581_v45 = vxor.u32 2147483648, %v2193_v20  ;;  %v1043_v52 = vor.u32 4788187, %v1042_v53  ;;  %v1857_v26 = vadd.s32 536870912, %v1856_v63  ;;  %v1046_v5 = vcvt.s32.f32 %v1039_v19 }
 0x21d   :  { %v1585_v40 = vsel %vm1583_vm11, %v1584_v37, %v2193_v20  ;;  %vm871_vm10 = vcmp.gt.s32.totalorder %v870_v54, 0  ;;  %vm1576_vm12 = vweird.f32 %v3062_v23  ;;  %v3337_v15 = vand.u32 3, %v1057_v28 }
 0x21e   :  { %v1582_v32 = vsel %vm1580_vm9, %v2191_v7, %v1581_v45  ;;  %v1044_v3 = vand.u32 2147483647, %v1043_v52  ;;  %v3331_v24 = vshrl.u32 %v1857_v26, 30  ;;  %v872_v43 = vsel %vm871_vm10, %v870_v54, 0 }
 0x21f   :  { %v1586_v1 = vsel %vm1579_vm6, %v1582_v32, %v1585_v40  ;;  %v874_v18 = vand.u32 31, %v872_v43  ;;  %v867_v59 = vand.u32 8388607, %v860_v10  ;;  %v873_v22 = vshrl.u32 %v872_v43, 5 }
 0x220   :  { %v1587_v35 = vsel %vm1576_vm12, nan, %v1586_v1  ;;  %v1047_v13 = vmul.f32 %v1046_v5, %v1044_v3  ;;  %v1859_v39 = vshll.u32 %v3331_v24, 30  ;;  %v2005_v23 = vadd.s32 4294967169, %v1696_v48 }
 0x221   :  { %1912 = vst [vmem:[#allocation2 + $0x60] sm:$0xff] %v1587_v35  ;;  %v875_v61 = vsub.s32 32, %v874_v18  ;;  %v877_v16 = vshll.u32 %v2234_v56, %v874_v18  ;;  %v880_v25 = vshll.u32 %v2235_v60, %v874_v18  ;;  %v883_v29 = vshll.u32 %v2236_v62, %v874_v18 }
 0x222   :  { %v1048_v58 = vxor.u32 2147483648, %v1047_v13  ;;  %v3341_v57 = vsub.s32 %v1856_v63, %v1859_v39  ;;  %v886_v38 = vshll.u32 %v2237_v0, %v874_v18  ;;  %v889_v34 = vshll.u32 %v2238_v2, %v874_v18 }
 0x223   :  { %v878_v12 = vshrl.u32 %v2235_v60, %v875_v61  ;;  %v881_v50 = vshrl.u32 %v2236_v62, %v875_v61  ;;  %v884_v42 = vshrl.u32 %v2237_v0, %v875_v61  ;;  %v887_v47 = vshrl.u32 %v2238_v2, %v875_v61 }
 0x224   :  { %v1049_v51 = vsel %vm966_vm5, %v1048_v58, %v1047_v13  ;;  %v1862_v8 = vsub.s32 0, %v3341_v57  ;;  %v890_v36 = vshrl.u32 %v2239_v9, %v875_v61  ;;  %v1852_v4 = vadd.s32 %v3294_v27, %v3299_v41 }
 0x225   :  { %v1052_v6 = vsel %vm3314_vm7, %v3125_v14, %v1049_v51  ;;  %v879_v33 = vor.u32 %v878_v12, %v877_v16  ;;  %v882_v30 = vor.u32 %v881_v50, %v880_v25  ;;  %v885_v17 = vor.u32 %v884_v42, %v883_v29 }
 0x226   :  { %2194 = vcosq.f32 %v1052_v6  ;;  %v2010_v46 = vmin.u32 %v1862_v8, %v3341_v57  ;;  %v888_v49 = vor.u32 %v887_v47, %v886_v38  ;;  %v868_v7 = vor.u32 8388608, %v867_v59 }
 0x227   :  { %2196 = vsinq.f32 %v1052_v6  ;;  %v1692_v19 = vand.u32 2147483647, %v3306_v44  ;;  %v876_v53 = vshrl.u32 %v2234_v56, %v875_v61  ;;  %v891_v63 = vor.u32 %v890_v36, %v889_v34 }
 0x228   :  { %v1864_v21 = vclz %v2010_v46  ;;  %vm892_vm13 = vcmp.lt.s32.totalorder %v873_v22, 1  ;;  %v1702_v20 = vadd.s32 1, %v2005_v23  ;;  %vm894_vm14 = vcmp.lt.s32.totalorder %v873_v22, 3 }
 0x229   :  { %vm895_vm15 = vcmp.lt.s32.totalorder %v873_v22, 4  ;;  %v900_v54 = vsel %vm892_vm13, %v879_v33, %v882_v30  ;;  %v904_v28 = vsel %vm892_vm13, %v882_v30, %v885_v17  ;;  %vm1798_vm0 = vcmp.lt.s32.totalorder %v3181_v11, 0 }
 0x22a   :  { %v2011_v37 = vadd.s32 4294967294, %v1864_v21  ;;  %v897_v45 = vsel %vm895_vm15, %v885_v17, 2102212464  ;;  %v901_v52 = vsel %vm895_vm15, %v888_v49, 920167782  ;;  %vm893_vm2 = vcmp.lt.s32.totalorder %v873_v22, 2 }
 0x22b   :  { %v905_v26 = vsel %vm895_vm15, %v891_v63, 1326507024  ;;  %v902_v27 = vsel %vm894_vm14, %v885_v17, %v901_v52  ;;  %v908_v32 = vshll.u32 %v868_v7, 8  ;;  %v896_v1 = vsel %vm892_vm13, %v876_v53, %v879_v33 }
 0x22c   :  { %vm2012_vm1 = vcmp.lt.s32.totalorder %v2011_v37, 0  ;;  %v906_v41 = vsel %vm894_vm14, %v888_v49, %v905_v26  ;;  %v903_v5 = vsel %vm893_vm2, %v900_v54, %v902_v27  ;;  %v898_v18 = vsel %vm894_vm14, %v882_v30, %v897_v45 }
 0x22d   :  { %v1867_v40 = vsel %vm2012_vm1, 0, %v2011_v37  ;;  %v907_v48 = vsel %vm893_vm2, %v904_v28, %v906_v41  ;;  %v3376_v39 = vmul.u32.u64.low %v908_v32, %v903_v5  ;;  %v3377_v59 = vmul.u32.u64.high %v908_v32, %v903_v5, %v3376_v39 }
 0x22e   :  { %v1868_v3 = vsub.s32 32, %v1867_v40  ;;  %v1872_v43 = vsub.s32 4294967266, %v1867_v40  ;;  %v3373_v35 = vmul.u32.u64.low %v908_v32, %v907_v48  ;;  %v3374_v13 = vmul.u32.u64.high %v908_v32, %v907_v48, %v3373_v35 }
 0x22f   :  { %vm1056_vm3 = vweird.f32 %v3125_v14  ;;  %v1869_v61 = vshll.u32 %v3341_v57, %v1867_v40  ;;  %vm1703_vm4 = vcmp.gt.s32.totalorder %v1702_v20, 0  ;;  %v1882_v16 = vsub.s32 4, %v3331_v24 }
 0x230   :  { %v1870_v58 = vshrl.u32 %v1852_v4, %v1868_v3  ;;  %v1873_v23 = vadd.s32 127, %v1872_v43  ;;  %v899_v12 = vsel %vm893_vm2, %v896_v1, %v898_v18  ;;  %v1699_v25 = vand.u32 8388607, %v1692_v19 }
 0x231   :  { %v1704_v50 = vsel %vm1703_vm4, %v1702_v20, 0  ;;  %vm1059_vm5 = vcmp.lt.s32.totalorder %v3337_v15, 2  ;;  %vm1060_vm6 = vcmp.eq.s32.totalorder %v3337_v15, 0  ;;  %vm1063_vm7 = vcmp.eq.s32.totalorder %v3337_v15, 2 }
 0x232   :  { %v1871_v51 = vor.u32 %v1870_v58, %v1869_v61  ;;  %v1874_v8 = vshll.u32 %v1873_v23, 23  ;;  %v1706_v29 = vand.u32 31, %v1704_v50  ;;  %vm917_vm8 = vc.u32 %v3374_v13, %v3376_v39 }
 0x233   :  { %v2195_v42 = vpop.eup %2194  ;;  %v918_v57 = vadd.s32 1, %v3377_v59  ;;  %vm3394_vm9 = vcmp.le.f32.partialorder %v1796_v31, 0.7853982  ;;  %v915_v47 = vmul.u32 %v908_v32, %v899_v12  ;;  %v1883_v17 = vsel %vm1798_vm0, %v1882_v16, %v3331_v24 }
 0x234   :  { %v2197_v22 = vpop.eup %2196  ;;  %v1064_v6 = vxor.u32 2147483648, %v2195_v42  ;;  %v1875_v38 = vor.u32 4788187, %v1874_v8  ;;  %v1707_v46 = vsub.s32 32, %v1706_v29  ;;  %v1700_v34 = vor.u32 8388608, %v1699_v25 }
 0x235   :  { %v1061_v30 = vxor.u32 2147483648, %v2197_v22  ;;  %v919_v49 = vsel %vm917_vm8, %v918_v57, %v3377_v59  ;;  %v1878_v21 = vcvt.s32.f32 %v1871_v51  ;;  %v1705_v53 = vshrl.u32 %v1704_v50, 5 }
 0x236   :  { %v1065_v36 = vsel %vm1063_vm7, %v1064_v6, %v2197_v22  ;;  %v1876_v4 = vand.u32 2147483647, %v1875_v38  ;;  %v920_v7 = vadd.s32 %v919_v49, %v915_v47  ;;  %v1710_v63 = vshrl.u32 %v2235_v60, %v1707_v46 }
 0x237   :  { %v1062_v31 = vsel %vm1060_vm6, %v2195_v42, %v1061_v30  ;;  %v1713_v20 = vshrl.u32 %v2236_v62, %v1707_v46  ;;  %v1716_v45 = vshrl.u32 %v2237_v0, %v1707_v46  ;;  %v1709_v28 = vshll.u32 %v2234_v56, %v1706_v29 }
 0x238   :  { %v1066_v37 = vsel %vm1059_vm5, %v1062_v31, %v1065_v36  ;;  %v1879_v54 = vmul.f32 %v1878_v21, %v1876_v4  ;;  %v921_v24 = vadd.s32 536870912, %v920_v7  ;;  %v1712_v26 = vshll.u32 %v2235_v60, %v1706_v29 }
 0x239   :  { %v1067_v52 = vsel %vm1056_vm3, nan, %v1066_v37  ;;  %v1715_v27 = vshll.u32 %v2236_v62, %v1706_v29  ;;  %v1718_v15 = vshll.u32 %v2237_v0, %v1706_v29  ;;  %v1719_v5 = vshrl.u32 %v2238_v2, %v1707_v46 }
 0x23a   :  { %1907 = vst [vmem:[#allocation2 + $0x38] sm:$0xff] %v1067_v52  ;;  %v1880_v41 = vxor.u32 2147483648, %v1879_v54  ;;  %v3414_v40 = vshrl.u32 %v921_v24, 30  ;;  %v1711_v48 = vor.u32 %v1710_v63, %v1709_v28  ;;  %v1714_v32 = vor.u32 %v1713_v20, %v1712_v26 }
 0x23b   :  { %v1721_v3 = vshll.u32 %v2238_v2, %v1706_v29  ;;  %v1722_v14 = vshrl.u32 %v2239_v9, %v1707_v46  ;;  %v1717_v62 = vor.u32 %v1716_v45, %v1715_v27  ;;  %v1720_v1 = vor.u32 %v1719_v5, %v1718_v15 }
 0x23c   :  { %v1881_v43 = vsel %vm1798_vm0, %v1880_v41, %v1879_v54  ;;  %v923_v60 = vshll.u32 %v3414_v40, 30  ;;  %v1885_v0 = vsel %vm3394_vm9, 0, %v1883_v17  ;;  %vm1724_vm11 = vcmp.lt.s32.totalorder %v1705_v53, 1 }
 0x23d   :  { %v1884_v18 = vsel %vm3394_vm9, %v3181_v11, %v1881_v43  ;;  %v1723_v35 = vor.u32 %v1722_v14, %v1721_v3  ;;  %v1740_v2 = vshll.u32 %v1700_v34, 8  ;;  %v1708_v9 = vshrl.u32 %v2234_v56, %v1707_v46 }
 0x23e   :  { %2198 = vcosq.f32 %v1884_v18  ;;  %v924_v59 = vsub.s32 %v920_v7, %v923_v60  ;;  %vm1727_vm10 = vcmp.lt.s32.totalorder %v1705_v53, 4  ;;  %v1732_v61 = vsel %vm1724_vm11, %v1711_v48, %v1714_v32 }
 0x23f   :  { %2200 = vsinq.f32 %v1884_v18  ;;  %vm1726_vm12 = vcmp.lt.s32.totalorder %v1705_v53, 3  ;;  %v1729_v23 = vsel %vm1727_vm10, %v1717_v62, 2102212464  ;;  %v1733_v16 = vsel %vm1727_vm10, %v1720_v1, 920167782 }
 0x240   :  { %v926_v58 = vsub.s32 0, %v924_v59  ;;  %vm1725_vm13 = vcmp.lt.s32.totalorder %v1705_v53, 2  ;;  %v1734_v12 = vsel %vm1726_vm12, %v1717_v62, %v1733_v16  ;;  %v1736_v25 = vsel %vm1724_vm11, %v1714_v32, %v1717_v62 }
 0x241   :  { %v1737_v50 = vsel %vm1727_vm10, %v1723_v35, 1326507024  ;;  %v1728_v8 = vsel %vm1724_vm11, %v1708_v9, %v1711_v48  ;;  %v1735_v29 = vsel %vm1725_vm13, %v1732_v61, %v1734_v12  ;;  %v1730_v57 = vsel %vm1726_vm12, %v1714_v32, %v1729_v23 }
 0x242   :  { %v1974_v51 = vmin.u32 %v926_v58, %v924_v59  ;;  %v1738_v42 = vsel %vm1726_vm12, %v1720_v1, %v1737_v50  ;;  %v3431_v6 = vmul.u32.u64.low %v1740_v2, %v1735_v29  ;;  %v3432_v56 = vmul.u32.u64.high %v1740_v2, %v1735_v29, %v3431_v6 }
 0x243   :  { %v1739_v22 = vsel %vm1725_vm13, %v1736_v25, %v1738_v42  ;;  %v1889_v38 = vadd.s32 3, %v1885_v0  ;;  %v1731_v17 = vsel %vm1725_vm13, %v1728_v8, %v1730_v57  ;;  %v916_v21 = vadd.s32 %v3376_v39, %v3374_v13 }
 0x244   :  { %v928_v33 = vclz %v1974_v51  ;;  %v3434_v47 = vmul.u32.u64.low %v1740_v2, %v1739_v22  ;;  %v3435_v46 = vmul.u32.u64.high %v1740_v2, %v1739_v22, %v3434_v47  ;;  %v1750_v49 = vadd.s32 1, %v3432_v56 }
 0x245   :  { %v1890_v34 = vand.u32 3, %v1889_v38  ;;  %v1747_v4 = vmul.u32 %v1740_v2, %v1731_v17  ;;  %vm1888_vm3 = vweird.f32 %v3181_v11  ;;  %vm862_vm4 = vcmp.lt.s32.totalorder %v3289_v55, 0 }
 0x246   :  { %v1975_v30 = vadd.s32 4294967294, %v928_v33  ;;  %vm1749_vm15 = vc.u32 %v3435_v46, %v3431_v6  ;;  %v946_v0 = vsub.s32 4, %v3414_v40  ;;  %vm861_vm5 = vcmp.le.f32.partialorder %v860_v10, 0.7853982 }
 0x247   :  { %v1751_v63 = vsel %vm1749_vm15, %v1750_v49, %v3432_v56  ;;  %vm1895_vm0 = vcmp.eq.s32.totalorder %v1890_v34, 2  ;;  %vm1892_vm1 = vcmp.eq.s32.totalorder %v1890_v34, 0  ;;  %vm1891_vm2 = vcmp.lt.s32.totalorder %v1890_v34, 2 }
 0x248   :  { %vm1976_vm14 = vcmp.lt.s32.totalorder %v1975_v30, 0  ;;  %v1752_v37 = vadd.s32 %v1751_v63, %v1747_v4  ;;  %v947_v9 = vsel %vm862_vm4, %v946_v0, %v3414_v40  ;;  %v1748_v16 = vadd.s32 %v3431_v6, %v3435_v46 }
 0x249   :  { %v931_v36 = vsel %vm1976_vm14, 0, %v1975_v30  ;;  %v949_v58 = vsel %vm861_vm5, 0, %v947_v9  ;;  %vm952_vm11 = vweird.f32 %v3289_v55  ;;  %vm1694_vm10 = vcmp.lt.s32.totalorder %v3306_v44, 0 }
 0x24a   :  { %v932_v7 = vsub.s32 32, %v931_v36  ;;  %v936_v31 = vsub.s32 4294967266, %v931_v36  ;;  %v933_v24 = vshll.u32 %v924_v59, %v931_v36  ;;  %v1753_v26 = vadd.s32 536870912, %v1752_v37 }
 0x24b   :  { %v2199_v20 = vpop.eup %2198  ;;  %v953_v50 = vadd.s32 3, %v949_v58  ;;  %vm1693_vm12 = vcmp.le.f32.partialorder %v1692_v19, 0.7853982 }
 0x24c   :  { %v2201_v54 = vpop.eup %2200  ;;  %v1896_v53 = vxor.u32 2147483648, %v2199_v20  ;;  %v934_v45 = vshrl.u32 %v916_v21, %v932_v7  ;;  %v937_v52 = vadd.s32 127, %v936_v31  ;;  %v1754_v39 = vshrl.u32 %v1753_v26, 30 }
 0x24d   :  { %v1893_v28 = vxor.u32 2147483648, %v2201_v54  ;;  %v954_v57 = vand.u32 3, %v953_v50 }
 0x24e   :  { %v1897_v27 = vsel %vm1895_vm0, %v1896_v53, %v2201_v54  ;;  %v935_v41 = vor.u32 %v934_v45, %v933_v24  ;;  %v938_v15 = vshll.u32 %v937_v52, 23  ;;  %v1755_v3 = vshll.u32 %v1754_v39, 30 }
 0x24f   :  { %v1894_v13 = vsel %vm1892_vm1, %v2199_v20, %v1893_v28  ;;  %vm959_vm7 = vcmp.eq.s32.totalorder %v954_v57, 2  ;;  %vm956_vm8 = vcmp.eq.s32.totalorder %v954_v57, 0  ;;  %vm955_vm9 = vcmp.lt.s32.totalorder %v954_v57, 2 }
 0x250   :  { %v1898_v5 = vsel %vm1891_vm2, %v1894_v13, %v1897_v27  ;;  %v939_v48 = vor.u32 4788187, %v938_v15  ;;  %v942_v43 = vcvt.s32.f32 %v935_v41  ;;  %v1756_v60 = vsub.s32 %v1752_v37, %v1755_v3 }
 0x251   :  { %v1899_v32 = vsel %vm1888_vm3, nan, %v1898_v5  ;;  %v1778_v36 = vsub.s32 4, %v1754_v39  ;;  %vm1784_vm0 = vweird.f32 %v3306_v44 }
 0x252   :  { %1915 = vst [vmem:[#allocation2 + $0x78] sm:$0xff] %v1899_v32  ;;  %v940_v14 = vand.u32 2147483647, %v939_v48  ;;  %v1758_v1 = vsub.s32 0, %v1756_v60 }
 0x253   :  { %v1779_v31 = vsel %vm1694_vm10, %v1778_v36, %v1754_v39 }
 0x254   :  { %v943_v62 = vmul.f32 %v942_v43, %v940_v14  ;;  %v2006_v35 = vmin.u32 %v1758_v1, %v1756_v60  ;;  %v1781_v63 = vsel %vm1693_vm12, 0, %v1779_v31 }
 0x255   :  { %v1785_v20 = vadd.s32 3, %v1781_v63 }
 0x256   :  { %v944_v18 = vxor.u32 2147483648, %v943_v62  ;;  %v1760_v2 = vclz %v2006_v35 }
 0x257   :  { %v1786_v37 = vand.u32 3, %v1785_v20 }
 0x258   :  { %v945_v11 = vsel %vm862_vm4, %v944_v18, %v943_v62  ;;  %v2007_v61 = vadd.s32 4294967294, %v1760_v2 }
 0x259   :  { %v948_v59 = vsel %vm861_vm5, %v3289_v55, %v945_v11  ;;  %vm1791_vm13 = vcmp.eq.s32.totalorder %v1786_v37, 2  ;;  %vm1788_vm14 = vcmp.eq.s32.totalorder %v1786_v37, 0  ;;  %vm1787_vm15 = vcmp.lt.s32.totalorder %v1786_v37, 2 }
 0x25a   :  { %2202 = vcosq.f32 %v948_v59  ;;  %vm2008_vm6 = vcmp.lt.s32.totalorder %v2007_v61, 0 }
 0x25b   :  { %2204 = vsinq.f32 %v948_v59  ;;  %v1763_v23 = vsel %vm2008_vm6, 0, %v2007_v61 }
 0x25c   :  { %v1764_v12 = vsub.s32 32, %v1763_v23  ;;  %v1768_v25 = vsub.s32 4294967266, %v1763_v23  ;;  %v1765_v51 = vshll.u32 %v1756_v60, %v1763_v23 }
 0x25e   :  { %v1766_v8 = vshrl.u32 %v1748_v16, %v1764_v12  ;;  %v1769_v10 = vadd.s32 127, %v1768_v25 }
 0x260   :  { %v1767_v29 = vor.u32 %v1766_v8, %v1765_v51  ;;  %v1770_v42 = vshll.u32 %v1769_v10, 23 }
 0x262   :  { %v1771_v22 = vor.u32 4788187, %v1770_v42  ;;  %v1774_v40 = vcvt.s32.f32 %v1767_v29 }
 0x264   :  { %v1772_v33 = vand.u32 2147483647, %v1771_v22 }
 0x266   :  { %v1775_v17 = vmul.f32 %v1774_v40, %v1772_v33 }
 0x267   :  { %v2203_v56 = vpop.eup %2202 }
 0x268   :  { %v2205_v38 = vpop.eup %2204  ;;  %v960_v47 = vxor.u32 2147483648, %v2203_v56  ;;  %v1776_v49 = vxor.u32 2147483648, %v1775_v17 }
 0x269   :  { %v957_v30 = vxor.u32 2147483648, %v2205_v38 }
 0x26a   :  { %v961_v6 = vsel %vm959_vm7, %v960_v47, %v2205_v38  ;;  %v1777_v21 = vsel %vm1694_vm10, %v1776_v49, %v1775_v17 }
 0x26b   :  { %v958_v46 = vsel %vm956_vm8, %v2203_v56, %v957_v30  ;;  %v1780_v7 = vsel %vm1693_vm12, %v3306_v44, %v1777_v21 }
 0x26c   :  { %v962_v34 = vsel %vm955_vm9, %v958_v46, %v961_v6  ;;  %2206 = vcosq.f32 %v1780_v7 }
 0x26d   :  { %v963_v4 = vsel %vm952_vm11, nan, %v962_v34  ;;  %2208 = vsinq.f32 %v1780_v7 }
 0x26e   :  { %1906 = vst [vmem:[#allocation2 + $0x30] sm:$0xff] %v963_v4 }
 0x279   :  { %v2207_v54 = vpop.eup %2206 }
 0x27a   :  { %v2209_v55 = vpop.eup %2208  ;;  %v1792_v53 = vxor.u32 2147483648, %v2207_v54 }
 0x27b   :  { %v1789_v24 = vxor.u32 2147483648, %v2209_v55 }
 0x27c   :  { %v1793_v45 = vsel %vm1791_vm13, %v1792_v53, %v2209_v55 }
 0x27d   :  { %v1790_v19 = vsel %vm1788_vm14, %v2207_v54, %v1789_v24 }
 0x27e   :  { %v1794_v52 = vsel %vm1787_vm15, %v1790_v19, %v1793_v45 }
 0x27f   :  { %v1795_v28 = vsel %vm1784_vm0, nan, %v1794_v52 }
 0x280   :  { %1914 = vst [vmem:[#allocation2 + $0x70] sm:$0xff] %v1795_v28 }
 0x281   :  { %2223 = shalt.err (!%p2220_p4)
}
 0x282   :  { %s2241_s30 = smov 128   ;;  %s2242_s4 = smov 8  }
 0x283   :  { %1927 = dma.vmem_to_hbm [thread:$0]  %s1922_s28, 2048, %s3463_s3, [#allocation3], %s2241_s30, %s2241_s30, %s2242_s4  }
 0x284   :  { %2232 = dma.done.wait [#allocation3], 2048  }
 0x285   :  { %2233 = vsyncadd [#allocation3], 4294965248 }
 0x286   :  { %1931 = vsyncpa [#allocation3], 1 }

</bundles_post_ra>
